<compile_context>
chip_gen: v7x
topology: tpu7x:2x2x1
jax: 0.10.0
libtpu: 0.0.40
codegen_flags: <defaults>
</compile_context>

<pallas_src>
import jax
import jax.numpy as jnp
from jax.experimental import pallas as pl
from jax.experimental.pallas import tpu as pltpu

# ----------------------------- configuration --------------------------------
INPUT_DIM   = 16   # vocab size
MODEL_DIM   = 32
N_HEAD      = 4
KEY_DIM     = 8
VALUE_DIM   = 8
HIDDEN_DIM  = 64
N_LAYERS    = 2
MAX_SEQ_LEN = 16
BATCH       = 2
SEQ_LEN     = 8
LN_EPS      = 1e-6

QKV_DIM = N_HEAD * (KEY_DIM + KEY_DIM + VALUE_DIM)   # 96
Q_OFF   = 0
K_OFF   = N_HEAD * KEY_DIM
V_OFF   = 2 * N_HEAD * KEY_DIM

# TODO(synk): nn.Dropout(p=0.1) is identity in eval mode; training-mode RNG
# dropout is intentionally not modeled here.


# ------------------------------ fused Pallas kernel ---------------------------

def _layer_norm(x, g, b):
    mu = jnp.mean(x, axis=-1, keepdims=True)
    var = jnp.mean((x - mu) ** 2, axis=-1, keepdims=True)
    return (x - mu) * jax.lax.rsqrt(var + LN_EPS) * g + b


def _encoder_kernel(tok_ref, embed_ref, pos_ref, mask_ref,
                    wqkv_ref, bqkv_ref, wo_ref, bo_ref, ln1g_ref, ln1b_ref,
                    w1_ref, b1_ref, w2_ref, b2_ref, ln2g_ref, ln2b_ref,
                    enc_ref, attn_ref):
    """One grid step == one batch element.  All layers processed in-kernel.

    tok:(S,1) int32  embed:(V,D)  pos:(S,D)  mask:(S,S)
    per-layer params indexed with a static python layer index l.
    enc:(S,D)   attn:(L, H*S, S)  (contiguous head-major slab per layer)
    """
    S, dk, dv, H = SEQ_LEN, KEY_DIM, VALUE_DIM, N_HEAD
    inv_scale = 1.0 / (float(dk) ** 0.5)

    # ---- embedding gather folded in as one-hot matmul + positional encoding ----
    tok = tok_ref[...]                                                # (S, 1) int32
    vocab_iota = jax.lax.broadcasted_iota(jnp.int32, (S, INPUT_DIM), 1)
    onehot = (tok == vocab_iota).astype(jnp.float32)                  # (S, V)
    x = jnp.dot(onehot, embed_ref[...], preferred_element_type=jnp.float32)
    x = x + pos_ref[...]                                              # (S, D)
    # dropout -> identity (eval mode)

    mask = mask_ref[...]                                              # (S, S)

    for l in range(N_LAYERS):                 # static unroll over layers
        # -------- multi-head self attention (fused QKV projection) --------
        residual = x
        qkv = (jnp.dot(x, wqkv_ref[l], preferred_element_type=jnp.float32)
               + bqkv_ref[l])                                         # (S, 3*H*dk)
        attn_rows, ctx_heads = [], []
        for h in range(H):                    # static unroll over heads
            q = qkv[:, Q_OFF + h * dk: Q_OFF + (h + 1) * dk]          # (S, dk)
            k = qkv[:, K_OFF + h * dk: K_OFF + (h + 1) * dk]          # (S, dk)
            v = qkv[:, V_OFF + h * dv: V_OFF + (h + 1) * dv]          # (S, dv)
            # q @ k^T without an explicit transpose
            scores = jax.lax.dot_general(
                q, k, (((1,), (1,)), ((), ())),
                preferred_element_type=jnp.float32) * inv_scale       # (S, S)
            scores = jnp.where(mask > 0, scores, -1e9)
            m = jnp.max(scores, axis=-1, keepdims=True)
            p = jnp.exp(scores - m)
            attn = p * pl.reciprocal(jnp.sum(p, axis=-1, keepdims=True),
                                     approx=True)
            attn_rows.append(attn)
            ctx_heads.append(jnp.dot(attn, v,
                                     preferred_element_type=jnp.float32))
        attn_ref[l] = jnp.concatenate(attn_rows, axis=0)              # (H*S, S)
        ctx = jnp.concatenate(ctx_heads, axis=-1)                     # (S, H*dv)
        y = jnp.dot(ctx, wo_ref[l], preferred_element_type=jnp.float32) + bo_ref[l]
        x = _layer_norm(y + residual, ln1g_ref[l], ln1b_ref[l])

        # -------- position-wise feed forward --------
        residual = x
        hdn = jnp.dot(x, w1_ref[l], preferred_element_type=jnp.float32) + b1_ref[l]
        hdn = jnp.maximum(hdn, 0.0)
        y = jnp.dot(hdn, w2_ref[l], preferred_element_type=jnp.float32) + b2_ref[l]
        x = _layer_norm(y + residual, ln2g_ref[l], ln2b_ref[l])

    enc_ref[...] = x


# ------------------------------ wrapper ---------------------------------------

@jax.jit
def encoder_forward(params, tokens, mask):
    """tokens: (B, S) int32, mask: (B, S, S) float32 (1 = attend, 0 = mask)."""
    B, S = tokens.shape
    D, L = MODEL_DIM, N_LAYERS
    tok3 = tokens.reshape(B, S, 1).astype(jnp.int32)
    pos = params["pos_enc"][:S]                                       # (S, D)

    def full(shape):
        return pl.BlockSpec(shape, lambda b: (0,) * len(shape))

    enc, attn = pl.pallas_call(
        _encoder_kernel,
        out_shape=(
            jax.ShapeDtypeStruct((B, S, D), jnp.float32),
            jax.ShapeDtypeStruct((B, L, N_HEAD * S, S), jnp.float32),
        ),
        grid=(B,),
        in_specs=[
            pl.BlockSpec((None, S, 1), lambda b: (b, 0, 0)),          # tokens
            full((INPUT_DIM, D)),                                     # embed table
            full((S, D)),                                             # pos enc
            pl.BlockSpec((None, S, S), lambda b: (b, 0, 0)),          # mask
            full((L, D, QKV_DIM)), full((L, 1, QKV_DIM)),             # fused QKV
            full((L, N_HEAD * VALUE_DIM, D)), full((L, 1, D)),        # out proj
            full((L, 1, D)), full((L, 1, D)),                         # LN1
            full((L, D, HIDDEN_DIM)), full((L, 1, HIDDEN_DIM)),       # FFN w1
            full((L, HIDDEN_DIM, D)), full((L, 1, D)),                # FFN w2
            full((L, 1, D)), full((L, 1, D)),                         # LN2
        ],
        out_specs=(
            pl.BlockSpec((None, S, D), lambda b: (b, 0, 0)),
            pl.BlockSpec((None, L, N_HEAD * S, S), lambda b: (b, 0, 0, 0)),
        ),
        compiler_params=pltpu.CompilerParams(
            dimension_semantics=("parallel",)),                       # 2 TCs on v7x
    )(tok3, params["embed"], pos, mask,
      params["wqkv"], params["bqkv"], params["wo"], params["bo"],
      params["ln1_g"], params["ln1_b"],
      params["w1"], params["b1"], params["w2"], params["b2"],
      params["ln2_g"], params["ln2_b"])

    attn = attn.reshape(B, L, N_HEAD, S, S)
    attn_list = [attn[:, l] for l in range(L)]                        # (B, H, S, S) each
    return enc, attn_list


# ------------------------------ params ----------------------------------------

def sinusoid_position_encoding(max_len, d_model):
    pos = jnp.arange(max_len, dtype=jnp.float32)[:, None]
    i = jnp.arange(d_model, dtype=jnp.float32)[None, :]
    angle = pos / jnp.power(10000.0, (2.0 * jnp.floor(i / 2.0)) / d_model)
    pe = jnp.where((jnp.arange(d_model)[None, :] % 2) == 0,
                   jnp.sin(angle), jnp.cos(angle))
    return pe.astype(jnp.float32)                                     # (max_len, d_model)


def init_params(key):
    keys = jax.random.split(key, 1 + N_LAYERS)
    s = 0.05
    wqkv, wo, w1, w2 = [], [], [], []
    for l in range(N_LAYERS):
        lk = jax.random.split(keys[1 + l], 6)
        wq = s * jax.random.normal(lk[0], (MODEL_DIM, N_HEAD * KEY_DIM), jnp.float32)
        wk = s * jax.random.normal(lk[1], (MODEL_DIM, N_HEAD * KEY_DIM), jnp.float32)
        wv = s * jax.random.normal(lk[2], (MODEL_DIM, N_HEAD * VALUE_DIM), jnp.float32)
        wqkv.append(jnp.concatenate([wq, wk, wv], axis=1))            # fused QKV weight
        wo.append(s * jax.random.normal(lk[3], (N_HEAD * VALUE_DIM, MODEL_DIM), jnp.float32))
        w1.append(s * jax.random.normal(lk[4], (MODEL_DIM, HIDDEN_DIM), jnp.float32))
        w2.append(s * jax.random.normal(lk[5], (HIDDEN_DIM, MODEL_DIM), jnp.float32))
    L = N_LAYERS
    return {
        "embed":  0.1 * jax.random.normal(keys[0], (INPUT_DIM, MODEL_DIM), jnp.float32),
        "pos_enc": sinusoid_position_encoding(MAX_SEQ_LEN, MODEL_DIM),
        "wqkv": jnp.stack(wqkv), "bqkv": jnp.zeros((L, 1, QKV_DIM), jnp.float32),
        "wo":   jnp.stack(wo),   "bo":   jnp.zeros((L, 1, MODEL_DIM), jnp.float32),
        "ln1_g": jnp.ones((L, 1, MODEL_DIM), jnp.float32),
        "ln1_b": jnp.zeros((L, 1, MODEL_DIM), jnp.float32),
        "w1":   jnp.stack(w1),   "b1":   jnp.zeros((L, 1, HIDDEN_DIM), jnp.float32),
        "w2":   jnp.stack(w2),   "b2":   jnp.zeros((L, 1, MODEL_DIM), jnp.float32),
        "ln2_g": jnp.ones((L, 1, MODEL_DIM), jnp.float32),
        "ln2_b": jnp.zeros((L, 1, MODEL_DIM), jnp.float32),
    }


# --------------------------------- main ---------------------------------------

if __name__ == "__main__":
    key = jax.random.PRNGKey(0)
    pkey, tkey = jax.random.split(key)
    params = init_params(pkey)

    tokens = jax.random.randint(tkey, (BATCH, SEQ_LEN), 0, INPUT_DIM, dtype=jnp.int32)
    # simple padding-style mask: last position of batch 1 is masked out
    mask = jnp.ones((BATCH, SEQ_LEN, SEQ_LEN), jnp.float32)
    mask = mask.at[1, :, SEQ_LEN - 1].set(0.0)

    encoding, attn_scores = encoder_forward(params, tokens, mask)
    encoding = jax.block_until_ready(encoding)
    for a in attn_scores:
        jax.block_until_ready(a)

    assert encoding.shape == (BATCH, SEQ_LEN, MODEL_DIM)
    assert len(attn_scores) == N_LAYERS
    assert attn_scores[0].shape == (BATCH, N_HEAD, SEQ_LEN, SEQ_LEN)
    assert bool(jnp.all(jnp.isfinite(encoding)))
    for a in attn_scores:
        assert bool(jnp.all(jnp.isfinite(a)))
    print("KERNEL_OK")
</pallas_src>

<mosaic_0001>
module attributes {stable_mosaic.version = 11 : i64} {
  func.func @_encoder_kernel(%arg0: i32, %arg1: memref<1x8x1xi32, #tpu.memory_space<vmem>>, %arg2: memref<16x32xf32, #tpu.memory_space<vmem>>, %arg3: memref<8x32xf32, #tpu.memory_space<vmem>>, %arg4: memref<1x8x8xf32, #tpu.memory_space<vmem>>, %arg5: memref<2x32x96xf32, #tpu.memory_space<vmem>>, %arg6: memref<2x1x96xf32, #tpu.memory_space<vmem>>, %arg7: memref<2x32x32xf32, #tpu.memory_space<vmem>>, %arg8: memref<2x1x32xf32, #tpu.memory_space<vmem>>, %arg9: memref<2x1x32xf32, #tpu.memory_space<vmem>>, %arg10: memref<2x1x32xf32, #tpu.memory_space<vmem>>, %arg11: memref<2x32x64xf32, #tpu.memory_space<vmem>>, %arg12: memref<2x1x64xf32, #tpu.memory_space<vmem>>, %arg13: memref<2x64x32xf32, #tpu.memory_space<vmem>>, %arg14: memref<2x1x32xf32, #tpu.memory_space<vmem>>, %arg15: memref<2x1x32xf32, #tpu.memory_space<vmem>>, %arg16: memref<2x1x32xf32, #tpu.memory_space<vmem>>, %arg17: memref<1x8x32xf32, #tpu.memory_space<vmem>>, %arg18: memref<1x2x32x8xf32, #tpu.memory_space<vmem>>) attributes {dimension_semantics = [#tpu.dimension_semantics<parallel>], iteration_bounds = array<i64: 2>, scalar_prefetch = 0 : i64, scratch_operands = 0 : i64, tpu.core_type = #tpu.core_type<tc>, window_params = [{transform_indices = @transform_0, window_bounds = array<i64: 1, 8, 1>}, {pipeline_mode = #tpu.pipeline_mode<synchronous>, transform_indices = @transform_1, window_bounds = array<i64: 16, 32>}, {pipeline_mode = #tpu.pipeline_mode<synchronous>, transform_indices = @transform_2, window_bounds = array<i64: 8, 32>}, {transform_indices = @transform_3, window_bounds = array<i64: 1, 8, 8>}, {pipeline_mode = #tpu.pipeline_mode<synchronous>, transform_indices = @transform_4, window_bounds = array<i64: 2, 32, 96>}, {pipeline_mode = #tpu.pipeline_mode<synchronous>, transform_indices = @transform_5, window_bounds = array<i64: 2, 1, 96>}, {pipeline_mode = #tpu.pipeline_mode<synchronous>, transform_indices = @transform_6, window_bounds = array<i64: 2, 32, 32>}, {pipeline_mode = #tpu.pipeline_mode<synchronous>, transform_indices = @transform_7, window_bounds = array<i64: 2, 1, 32>}, {pipeline_mode = #tpu.pipeline_mode<synchronous>, transform_indices = @transform_8, window_bounds = array<i64: 2, 1, 32>}, {pipeline_mode = #tpu.pipeline_mode<synchronous>, transform_indices = @transform_9, window_bounds = array<i64: 2, 1, 32>}, {pipeline_mode = #tpu.pipeline_mode<synchronous>, transform_indices = @transform_10, window_bounds = array<i64: 2, 32, 64>}, {pipeline_mode = #tpu.pipeline_mode<synchronous>, transform_indices = @transform_11, window_bounds = array<i64: 2, 1, 64>}, {pipeline_mode = #tpu.pipeline_mode<synchronous>, transform_indices = @transform_12, window_bounds = array<i64: 2, 64, 32>}, {pipeline_mode = #tpu.pipeline_mode<synchronous>, transform_indices = @transform_13, window_bounds = array<i64: 2, 1, 32>}, {pipeline_mode = #tpu.pipeline_mode<synchronous>, transform_indices = @transform_14, window_bounds = array<i64: 2, 1, 32>}, {pipeline_mode = #tpu.pipeline_mode<synchronous>, transform_indices = @transform_15, window_bounds = array<i64: 2, 1, 32>}, {transform_indices = @transform_16, window_bounds = array<i64: 1, 8, 32>}, {transform_indices = @transform_17, window_bounds = array<i64: 1, 2, 32, 8>}]} {
    %c0 = arith.constant 0 : index
    %c0_0 = arith.constant 0 : index
    %c0_1 = arith.constant 0 : index
    %0 = vector.load %arg1[%c0, %c0_0, %c0_1] : memref<1x8x1xi32, #tpu.memory_space<vmem>>, vector<1x8x1xi32>
    %1 = vector.shape_cast %0 : vector<1x8x1xi32> to vector<8x1xi32>
    %2 = tpu.iota {dimensions = array<i32: 1>} : vector<8x16xi32>
    %3 = vector.broadcast %1 : vector<8x1xi32> to vector<8x16xi32>
    %4 = arith.cmpi eq, %3, %2 : vector<8x16xi32>
    %5 = arith.extui %4 : vector<8x16xi1> to vector<8x16xi32>
    %6 = arith.sitofp %5 : vector<8x16xi32> to vector<8x16xf32>
    %c0_2 = arith.constant 0 : index
    %c0_3 = arith.constant 0 : index
    %7 = vector.load %arg2[%c0_2, %c0_3] : memref<16x32xf32, #tpu.memory_space<vmem>>, vector<16x32xf32>
    %cst = arith.constant dense<0.000000e+00> : vector<8x32xf32>
    %8 = tpu.matmul %6, %7, %cst {dimension_numbers = #tpu.dot_dimension_numbers<[1], [0], [0], [1], [0, 0, 1, 1], [], []>} : vector<8x16xf32>, vector<16x32xf32>, vector<8x32xf32> -> vector<8x32xf32>
    %c0_4 = arith.constant 0 : index
    %c0_5 = arith.constant 0 : index
    %9 = vector.load %arg3[%c0_4, %c0_5] : memref<8x32xf32, #tpu.memory_space<vmem>>, vector<8x32xf32>
    %10 = arith.addf %8, %9 : vector<8x32xf32>
    %c0_6 = arith.constant 0 : index
    %c0_7 = arith.constant 0 : index
    %c0_8 = arith.constant 0 : index
    %11 = vector.load %arg4[%c0_6, %c0_7, %c0_8] : memref<1x8x8xf32, #tpu.memory_space<vmem>>, vector<1x8x8xf32>
    %12 = vector.shape_cast %11 : vector<1x8x8xf32> to vector<8x8xf32>
    %c0_9 = arith.constant 0 : index
    %c0_10 = arith.constant 0 : index
    %c0_11 = arith.constant 0 : index
    %13 = vector.load %arg5[%c0_9, %c0_10, %c0_11] : memref<2x32x96xf32, #tpu.memory_space<vmem>>, vector<1x32x96xf32>
    %14 = vector.shape_cast %13 : vector<1x32x96xf32> to vector<32x96xf32>
    %cst_12 = arith.constant dense<0.000000e+00> : vector<8x96xf32>
    %15 = tpu.matmul %10, %14, %cst_12 {dimension_numbers = #tpu.dot_dimension_numbers<[1], [0], [0], [1], [0, 0, 1, 1], [], []>} : vector<8x32xf32>, vector<32x96xf32>, vector<8x96xf32> -> vector<8x96xf32>
    %c0_13 = arith.constant 0 : index
    %c0_14 = arith.constant 0 : index
    %c0_15 = arith.constant 0 : index
    %16 = vector.load %arg6[%c0_13, %c0_14, %c0_15] : memref<2x1x96xf32, #tpu.memory_space<vmem>>, vector<1x1x96xf32>
    %17 = vector.shape_cast %16 : vector<1x1x96xf32> to vector<1x96xf32>
    %18 = vector.broadcast %17 : vector<1x96xf32> to vector<8x96xf32>
    %19 = arith.addf %15, %18 : vector<8x96xf32>
    %20 = vector.extract_strided_slice %19 {offsets = [0, 0], sizes = [8, 8], strides = [1, 1]} : vector<8x96xf32> to vector<8x8xf32>
    %21 = vector.extract_strided_slice %19 {offsets = [0, 32], sizes = [8, 8], strides = [1, 1]} : vector<8x96xf32> to vector<8x8xf32>
    %22 = vector.extract_strided_slice %19 {offsets = [0, 64], sizes = [8, 8], strides = [1, 1]} : vector<8x96xf32> to vector<8x8xf32>
    %cst_16 = arith.constant dense<0.000000e+00> : vector<8x8xf32>
    %23 = tpu.matmul %20, %21, %cst_16 {dimension_numbers = #tpu.dot_dimension_numbers<[1], [1], [0], [0], [0, 0, 1, 0], [], []>} : vector<8x8xf32>, vector<8x8xf32>, vector<8x8xf32> -> vector<8x8xf32>
    %cst_17 = arith.constant 0.353553385 : f32
    %24 = vector.broadcast %cst_17 : f32 to vector<8x8xf32>
    %25 = arith.mulf %23, %24 : vector<8x8xf32>
    %cst_18 = arith.constant 0.000000e+00 : f32
    %26 = vector.broadcast %cst_18 : f32 to vector<8x8xf32>
    %27 = arith.cmpf ogt, %12, %26 : vector<8x8xf32>
    %cst_19 = arith.constant -1.000000e+09 : f32
    %28 = vector.broadcast %cst_19 : f32 to vector<8x8xf32>
    %29 = arith.select %27, %25, %28 : vector<8x8xi1>, vector<8x8xf32>
    %cst_20 = arith.constant dense<0xFF800000> : vector<8xf32>
    %30 = vector.multi_reduction <maximumf>, %29, %cst_20 [1] : vector<8x8xf32> to vector<8xf32>
    %31 = vector.shape_cast %30 : vector<8xf32> to vector<8x1xf32>
    %32 = vector.broadcast %31 : vector<8x1xf32> to vector<8x8xf32>
    %33 = arith.subf %29, %32 : vector<8x8xf32>
    %34 = math.exp %33 : vector<8x8xf32>
    %cst_21 = arith.constant dense<0.000000e+00> : vector<8xf32>
    %35 = vector.multi_reduction <add>, %34, %cst_21 [1] : vector<8x8xf32> to vector<8xf32>
    %36 = vector.shape_cast %35 : vector<8xf32> to vector<8x1xf32>
    %37 = tpu.reciprocal %36 {approx = true} : vector<8x1xf32> -> vector<8x1xf32>
    %38 = vector.broadcast %37 : vector<8x1xf32> to vector<8x8xf32>
    %39 = arith.mulf %34, %38 : vector<8x8xf32>
    %cst_22 = arith.constant dense<0.000000e+00> : vector<8x8xf32>
    %40 = tpu.matmul %39, %22, %cst_22 {dimension_numbers = #tpu.dot_dimension_numbers<[1], [0], [0], [1], [0, 0, 1, 1], [], []>} : vector<8x8xf32>, vector<8x8xf32>, vector<8x8xf32> -> vector<8x8xf32>
    %41 = vector.extract_strided_slice %19 {offsets = [0, 8], sizes = [8, 8], strides = [1, 1]} : vector<8x96xf32> to vector<8x8xf32>
    %42 = vector.extract_strided_slice %19 {offsets = [0, 40], sizes = [8, 8], strides = [1, 1]} : vector<8x96xf32> to vector<8x8xf32>
    %43 = vector.extract_strided_slice %19 {offsets = [0, 72], sizes = [8, 8], strides = [1, 1]} : vector<8x96xf32> to vector<8x8xf32>
    %cst_23 = arith.constant dense<0.000000e+00> : vector<8x8xf32>
    %44 = tpu.matmul %41, %42, %cst_23 {dimension_numbers = #tpu.dot_dimension_numbers<[1], [1], [0], [0], [0, 0, 1, 0], [], []>} : vector<8x8xf32>, vector<8x8xf32>, vector<8x8xf32> -> vector<8x8xf32>
    %cst_24 = arith.constant 0.353553385 : f32
    %45 = vector.broadcast %cst_24 : f32 to vector<8x8xf32>
    %46 = arith.mulf %44, %45 : vector<8x8xf32>
    %cst_25 = arith.constant 0.000000e+00 : f32
    %47 = vector.broadcast %cst_25 : f32 to vector<8x8xf32>
    %48 = arith.cmpf ogt, %12, %47 : vector<8x8xf32>
    %cst_26 = arith.constant -1.000000e+09 : f32
    %49 = vector.broadcast %cst_26 : f32 to vector<8x8xf32>
    %50 = arith.select %48, %46, %49 : vector<8x8xi1>, vector<8x8xf32>
    %cst_27 = arith.constant dense<0xFF800000> : vector<8xf32>
    %51 = vector.multi_reduction <maximumf>, %50, %cst_27 [1] : vector<8x8xf32> to vector<8xf32>
    %52 = vector.shape_cast %51 : vector<8xf32> to vector<8x1xf32>
    %53 = vector.broadcast %52 : vector<8x1xf32> to vector<8x8xf32>
    %54 = arith.subf %50, %53 : vector<8x8xf32>
    %55 = math.exp %54 : vector<8x8xf32>
    %cst_28 = arith.constant dense<0.000000e+00> : vector<8xf32>
    %56 = vector.multi_reduction <add>, %55, %cst_28 [1] : vector<8x8xf32> to vector<8xf32>
    %57 = vector.shape_cast %56 : vector<8xf32> to vector<8x1xf32>
    %58 = tpu.reciprocal %57 {approx = true} : vector<8x1xf32> -> vector<8x1xf32>
    %59 = vector.broadcast %58 : vector<8x1xf32> to vector<8x8xf32>
    %60 = arith.mulf %55, %59 : vector<8x8xf32>
    %cst_29 = arith.constant dense<0.000000e+00> : vector<8x8xf32>
    %61 = tpu.matmul %60, %43, %cst_29 {dimension_numbers = #tpu.dot_dimension_numbers<[1], [0], [0], [1], [0, 0, 1, 1], [], []>} : vector<8x8xf32>, vector<8x8xf32>, vector<8x8xf32> -> vector<8x8xf32>
    %62 = vector.extract_strided_slice %19 {offsets = [0, 16], sizes = [8, 8], strides = [1, 1]} : vector<8x96xf32> to vector<8x8xf32>
    %63 = vector.extract_strided_slice %19 {offsets = [0, 48], sizes = [8, 8], strides = [1, 1]} : vector<8x96xf32> to vector<8x8xf32>
    %64 = vector.extract_strided_slice %19 {offsets = [0, 80], sizes = [8, 8], strides = [1, 1]} : vector<8x96xf32> to vector<8x8xf32>
    %cst_30 = arith.constant dense<0.000000e+00> : vector<8x8xf32>
    %65 = tpu.matmul %62, %63, %cst_30 {dimension_numbers = #tpu.dot_dimension_numbers<[1], [1], [0], [0], [0, 0, 1, 0], [], []>} : vector<8x8xf32>, vector<8x8xf32>, vector<8x8xf32> -> vector<8x8xf32>
    %cst_31 = arith.constant 0.353553385 : f32
    %66 = vector.broadcast %cst_31 : f32 to vector<8x8xf32>
    %67 = arith.mulf %65, %66 : vector<8x8xf32>
    %cst_32 = arith.constant 0.000000e+00 : f32
    %68 = vector.broadcast %cst_32 : f32 to vector<8x8xf32>
    %69 = arith.cmpf ogt, %12, %68 : vector<8x8xf32>
    %cst_33 = arith.constant -1.000000e+09 : f32
    %70 = vector.broadcast %cst_33 : f32 to vector<8x8xf32>
    %71 = arith.select %69, %67, %70 : vector<8x8xi1>, vector<8x8xf32>
    %cst_34 = arith.constant dense<0xFF800000> : vector<8xf32>
    %72 = vector.multi_reduction <maximumf>, %71, %cst_34 [1] : vector<8x8xf32> to vector<8xf32>
    %73 = vector.shape_cast %72 : vector<8xf32> to vector<8x1xf32>
    %74 = vector.broadcast %73 : vector<8x1xf32> to vector<8x8xf32>
    %75 = arith.subf %71, %74 : vector<8x8xf32>
    %76 = math.exp %75 : vector<8x8xf32>
    %cst_35 = arith.constant dense<0.000000e+00> : vector<8xf32>
    %77 = vector.multi_reduction <add>, %76, %cst_35 [1] : vector<8x8xf32> to vector<8xf32>
    %78 = vector.shape_cast %77 : vector<8xf32> to vector<8x1xf32>
    %79 = tpu.reciprocal %78 {approx = true} : vector<8x1xf32> -> vector<8x1xf32>
    %80 = vector.broadcast %79 : vector<8x1xf32> to vector<8x8xf32>
    %81 = arith.mulf %76, %80 : vector<8x8xf32>
    %cst_36 = arith.constant dense<0.000000e+00> : vector<8x8xf32>
    %82 = tpu.matmul %81, %64, %cst_36 {dimension_numbers = #tpu.dot_dimension_numbers<[1], [0], [0], [1], [0, 0, 1, 1], [], []>} : vector<8x8xf32>, vector<8x8xf32>, vector<8x8xf32> -> vector<8x8xf32>
    %83 = vector.extract_strided_slice %19 {offsets = [0, 24], sizes = [8, 8], strides = [1, 1]} : vector<8x96xf32> to vector<8x8xf32>
    %84 = vector.extract_strided_slice %19 {offsets = [0, 56], sizes = [8, 8], strides = [1, 1]} : vector<8x96xf32> to vector<8x8xf32>
    %85 = vector.extract_strided_slice %19 {offsets = [0, 88], sizes = [8, 8], strides = [1, 1]} : vector<8x96xf32> to vector<8x8xf32>
    %cst_37 = arith.constant dense<0.000000e+00> : vector<8x8xf32>
    %86 = tpu.matmul %83, %84, %cst_37 {dimension_numbers = #tpu.dot_dimension_numbers<[1], [1], [0], [0], [0, 0, 1, 0], [], []>} : vector<8x8xf32>, vector<8x8xf32>, vector<8x8xf32> -> vector<8x8xf32>
    %cst_38 = arith.constant 0.353553385 : f32
    %87 = vector.broadcast %cst_38 : f32 to vector<8x8xf32>
    %88 = arith.mulf %86, %87 : vector<8x8xf32>
    %cst_39 = arith.constant 0.000000e+00 : f32
    %89 = vector.broadcast %cst_39 : f32 to vector<8x8xf32>
    %90 = arith.cmpf ogt, %12, %89 : vector<8x8xf32>
    %cst_40 = arith.constant -1.000000e+09 : f32
    %91 = vector.broadcast %cst_40 : f32 to vector<8x8xf32>
    %92 = arith.select %90, %88, %91 : vector<8x8xi1>, vector<8x8xf32>
    %cst_41 = arith.constant dense<0xFF800000> : vector<8xf32>
    %93 = vector.multi_reduction <maximumf>, %92, %cst_41 [1] : vector<8x8xf32> to vector<8xf32>
    %94 = vector.shape_cast %93 : vector<8xf32> to vector<8x1xf32>
    %95 = vector.broadcast %94 : vector<8x1xf32> to vector<8x8xf32>
    %96 = arith.subf %92, %95 : vector<8x8xf32>
    %97 = math.exp %96 : vector<8x8xf32>
    %cst_42 = arith.constant dense<0.000000e+00> : vector<8xf32>
    %98 = vector.multi_reduction <add>, %97, %cst_42 [1] : vector<8x8xf32> to vector<8xf32>
    %99 = vector.shape_cast %98 : vector<8xf32> to vector<8x1xf32>
    %100 = tpu.reciprocal %99 {approx = true} : vector<8x1xf32> -> vector<8x1xf32>
    %101 = vector.broadcast %100 : vector<8x1xf32> to vector<8x8xf32>
    %102 = arith.mulf %97, %101 : vector<8x8xf32>
    %cst_43 = arith.constant dense<0.000000e+00> : vector<8x8xf32>
    %103 = tpu.matmul %102, %85, %cst_43 {dimension_numbers = #tpu.dot_dimension_numbers<[1], [0], [0], [1], [0, 0, 1, 1], [], []>} : vector<8x8xf32>, vector<8x8xf32>, vector<8x8xf32> -> vector<8x8xf32>
    %104 = tpu.concatenate %39, %60, %81, %102 in 0 : vector<8x8xf32>, vector<8x8xf32>, vector<8x8xf32>, vector<8x8xf32> -> vector<32x8xf32>
    %c0_44 = arith.constant 0 : index
    %c0_45 = arith.constant 0 : index
    %c0_46 = arith.constant 0 : index
    %c0_47 = arith.constant 0 : index
    %105 = vector.load %arg18[%c0_44, %c0_45, %c0_46, %c0_47] : memref<1x2x32x8xf32, #tpu.memory_space<vmem>>, vector<1x1x32x8xf32>
    %106 = vector.shape_cast %105 : vector<1x1x32x8xf32> to vector<32x8xf32>
    %107 = vector.shape_cast %104 : vector<32x8xf32> to vector<1x1x32x8xf32>
    tpu.vector_store %arg18[%c0_44, %c0_45, %c0_46, %c0_47], %107 {strides = array<i32>} : memref<1x2x32x8xf32, #tpu.memory_space<vmem>>, vector<1x1x32x8xf32>,
    %108 = tpu.concatenate %40, %61, %82, %103 in 1 : vector<8x8xf32>, vector<8x8xf32>, vector<8x8xf32>, vector<8x8xf32> -> vector<8x32xf32>
    %c0_48 = arith.constant 0 : index
    %c0_49 = arith.constant 0 : index
    %c0_50 = arith.constant 0 : index
    %109 = vector.load %arg7[%c0_48, %c0_49, %c0_50] : memref<2x32x32xf32, #tpu.memory_space<vmem>>, vector<1x32x32xf32>
    %110 = vector.shape_cast %109 : vector<1x32x32xf32> to vector<32x32xf32>
    %cst_51 = arith.constant dense<0.000000e+00> : vector<8x32xf32>
    %111 = tpu.matmul %108, %110, %cst_51 {dimension_numbers = #tpu.dot_dimension_numbers<[1], [0], [0], [1], [0, 0, 1, 1], [], []>} : vector<8x32xf32>, vector<32x32xf32>, vector<8x32xf32> -> vector<8x32xf32>
    %c0_52 = arith.constant 0 : index
    %c0_53 = arith.constant 0 : index
    %c0_54 = arith.constant 0 : index
    %112 = vector.load %arg8[%c0_52, %c0_53, %c0_54] : memref<2x1x32xf32, #tpu.memory_space<vmem>>, vector<1x1x32xf32>
    %113 = vector.shape_cast %112 : vector<1x1x32xf32> to vector<1x32xf32>
    %114 = vector.broadcast %113 : vector<1x32xf32> to vector<8x32xf32>
    %115 = arith.addf %111, %114 : vector<8x32xf32>
    %116 = arith.addf %115, %10 : vector<8x32xf32>
    %c0_55 = arith.constant 0 : index
    %c0_56 = arith.constant 0 : index
    %c0_57 = arith.constant 0 : index
    %117 = vector.load %arg9[%c0_55, %c0_56, %c0_57] : memref<2x1x32xf32, #tpu.memory_space<vmem>>, vector<1x1x32xf32>
    %118 = vector.shape_cast %117 : vector<1x1x32xf32> to vector<1x32xf32>
    %c0_58 = arith.constant 0 : index
    %c0_59 = arith.constant 0 : index
    %c0_60 = arith.constant 0 : index
    %119 = vector.load %arg10[%c0_58, %c0_59, %c0_60] : memref<2x1x32xf32, #tpu.memory_space<vmem>>, vector<1x1x32xf32>
    %120 = vector.shape_cast %119 : vector<1x1x32xf32> to vector<1x32xf32>
    %cst_61 = arith.constant dense<0.000000e+00> : vector<8xf32>
    %121 = vector.multi_reduction <add>, %116, %cst_61 [1] : vector<8x32xf32> to vector<8xf32>
    %122 = vector.shape_cast %121 : vector<8xf32> to vector<8x1xf32>
    %cst_62 = arith.constant 3.200000e+01 : f32
    %123 = vector.broadcast %cst_62 : f32 to vector<8x1xf32>
    %124 = arith.divf %122, %123 : vector<8x1xf32>
    %125 = vector.broadcast %124 : vector<8x1xf32> to vector<8x32xf32>
    %126 = arith.subf %116, %125 : vector<8x32xf32>
    %127 = arith.mulf %126, %126 : vector<8x32xf32>
    %cst_63 = arith.constant dense<0.000000e+00> : vector<8xf32>
    %128 = vector.multi_reduction <add>, %127, %cst_63 [1] : vector<8x32xf32> to vector<8xf32>
    %129 = vector.shape_cast %128 : vector<8xf32> to vector<8x1xf32>
    %cst_64 = arith.constant 3.200000e+01 : f32
    %130 = vector.broadcast %cst_64 : f32 to vector<8x1xf32>
    %131 = arith.divf %129, %130 : vector<8x1xf32>
    %132 = vector.broadcast %124 : vector<8x1xf32> to vector<8x32xf32>
    %133 = arith.subf %116, %132 : vector<8x32xf32>
    %cst_65 = arith.constant 9.99999997E-7 : f32
    %134 = vector.broadcast %cst_65 : f32 to vector<8x1xf32>
    %135 = arith.addf %131, %134 : vector<8x1xf32>
    %136 = math.rsqrt %135 : vector<8x1xf32>
    %137 = vector.broadcast %136 : vector<8x1xf32> to vector<8x32xf32>
    %138 = arith.mulf %133, %137 : vector<8x32xf32>
    %139 = vector.broadcast %118 : vector<1x32xf32> to vector<8x32xf32>
    %140 = arith.mulf %138, %139 : vector<8x32xf32>
    %141 = vector.broadcast %120 : vector<1x32xf32> to vector<8x32xf32>
    %142 = arith.addf %140, %141 : vector<8x32xf32>
    %c0_66 = arith.constant 0 : index
    %c0_67 = arith.constant 0 : index
    %c0_68 = arith.constant 0 : index
    %143 = vector.load %arg11[%c0_66, %c0_67, %c0_68] : memref<2x32x64xf32, #tpu.memory_space<vmem>>, vector<1x32x64xf32>
    %144 = vector.shape_cast %143 : vector<1x32x64xf32> to vector<32x64xf32>
    %cst_69 = arith.constant dense<0.000000e+00> : vector<8x64xf32>
    %145 = tpu.matmul %142, %144, %cst_69 {dimension_numbers = #tpu.dot_dimension_numbers<[1], [0], [0], [1], [0, 0, 1, 1], [], []>} : vector<8x32xf32>, vector<32x64xf32>, vector<8x64xf32> -> vector<8x64xf32>
    %c0_70 = arith.constant 0 : index
    %c0_71 = arith.constant 0 : index
    %c0_72 = arith.constant 0 : index
    %146 = vector.load %arg12[%c0_70, %c0_71, %c0_72] : memref<2x1x64xf32, #tpu.memory_space<vmem>>, vector<1x1x64xf32>
    %147 = vector.shape_cast %146 : vector<1x1x64xf32> to vector<1x64xf32>
    %148 = vector.broadcast %147 : vector<1x64xf32> to vector<8x64xf32>
    %149 = arith.addf %145, %148 : vector<8x64xf32>
    %cst_73 = arith.constant 0.000000e+00 : f32
    %150 = vector.broadcast %cst_73 : f32 to vector<8x64xf32>
    %151 = arith.maximumf %149, %150 : vector<8x64xf32>
    %c0_74 = arith.constant 0 : index
    %c0_75 = arith.constant 0 : index
    %c0_76 = arith.constant 0 : index
    %152 = vector.load %arg13[%c0_74, %c0_75, %c0_76] : memref<2x64x32xf32, #tpu.memory_space<vmem>>, vector<1x64x32xf32>
    %153 = vector.shape_cast %152 : vector<1x64x32xf32> to vector<64x32xf32>
    %cst_77 = arith.constant dense<0.000000e+00> : vector<8x32xf32>
    %154 = tpu.matmul %151, %153, %cst_77 {dimension_numbers = #tpu.dot_dimension_numbers<[1], [0], [0], [1], [0, 0, 1, 1], [], []>} : vector<8x64xf32>, vector<64x32xf32>, vector<8x32xf32> -> vector<8x32xf32>
    %c0_78 = arith.constant 0 : index
    %c0_79 = arith.constant 0 : index
    %c0_80 = arith.constant 0 : index
    %155 = vector.load %arg14[%c0_78, %c0_79, %c0_80] : memref<2x1x32xf32, #tpu.memory_space<vmem>>, vector<1x1x32xf32>
    %156 = vector.shape_cast %155 : vector<1x1x32xf32> to vector<1x32xf32>
    %157 = vector.broadcast %156 : vector<1x32xf32> to vector<8x32xf32>
    %158 = arith.addf %154, %157 : vector<8x32xf32>
    %159 = arith.addf %158, %142 : vector<8x32xf32>
    %c0_81 = arith.constant 0 : index
    %c0_82 = arith.constant 0 : index
    %c0_83 = arith.constant 0 : index
    %160 = vector.load %arg15[%c0_81, %c0_82, %c0_83] : memref<2x1x32xf32, #tpu.memory_space<vmem>>, vector<1x1x32xf32>
    %161 = vector.shape_cast %160 : vector<1x1x32xf32> to vector<1x32xf32>
    %c0_84 = arith.constant 0 : index
    %c0_85 = arith.constant 0 : index
    %c0_86 = arith.constant 0 : index
    %162 = vector.load %arg16[%c0_84, %c0_85, %c0_86] : memref<2x1x32xf32, #tpu.memory_space<vmem>>, vector<1x1x32xf32>
    %163 = vector.shape_cast %162 : vector<1x1x32xf32> to vector<1x32xf32>
    %cst_87 = arith.constant dense<0.000000e+00> : vector<8xf32>
    %164 = vector.multi_reduction <add>, %159, %cst_87 [1] : vector<8x32xf32> to vector<8xf32>
    %165 = vector.shape_cast %164 : vector<8xf32> to vector<8x1xf32>
    %cst_88 = arith.constant 3.200000e+01 : f32
    %166 = vector.broadcast %cst_88 : f32 to vector<8x1xf32>
    %167 = arith.divf %165, %166 : vector<8x1xf32>
    %168 = vector.broadcast %167 : vector<8x1xf32> to vector<8x32xf32>
    %169 = arith.subf %159, %168 : vector<8x32xf32>
    %170 = arith.mulf %169, %169 : vector<8x32xf32>
    %cst_89 = arith.constant dense<0.000000e+00> : vector<8xf32>
    %171 = vector.multi_reduction <add>, %170, %cst_89 [1] : vector<8x32xf32> to vector<8xf32>
    %172 = vector.shape_cast %171 : vector<8xf32> to vector<8x1xf32>
    %cst_90 = arith.constant 3.200000e+01 : f32
    %173 = vector.broadcast %cst_90 : f32 to vector<8x1xf32>
    %174 = arith.divf %172, %173 : vector<8x1xf32>
    %175 = vector.broadcast %167 : vector<8x1xf32> to vector<8x32xf32>
    %176 = arith.subf %159, %175 : vector<8x32xf32>
    %cst_91 = arith.constant 9.99999997E-7 : f32
    %177 = vector.broadcast %cst_91 : f32 to vector<8x1xf32>
    %178 = arith.addf %174, %177 : vector<8x1xf32>
    %179 = math.rsqrt %178 : vector<8x1xf32>
    %180 = vector.broadcast %179 : vector<8x1xf32> to vector<8x32xf32>
    %181 = arith.mulf %176, %180 : vector<8x32xf32>
    %182 = vector.broadcast %161 : vector<1x32xf32> to vector<8x32xf32>
    %183 = arith.mulf %181, %182 : vector<8x32xf32>
    %184 = vector.broadcast %163 : vector<1x32xf32> to vector<8x32xf32>
    %185 = arith.addf %183, %184 : vector<8x32xf32>
    %c1 = arith.constant 1 : index
    %c0_92 = arith.constant 0 : index
    %c0_93 = arith.constant 0 : index
    %186 = vector.load %arg5[%c1, %c0_92, %c0_93] : memref<2x32x96xf32, #tpu.memory_space<vmem>>, vector<1x32x96xf32>
    %187 = vector.shape_cast %186 : vector<1x32x96xf32> to vector<32x96xf32>
    %cst_94 = arith.constant dense<0.000000e+00> : vector<8x96xf32>
    %188 = tpu.matmul %185, %187, %cst_94 {dimension_numbers = #tpu.dot_dimension_numbers<[1], [0], [0], [1], [0, 0, 1, 1], [], []>} : vector<8x32xf32>, vector<32x96xf32>, vector<8x96xf32> -> vector<8x96xf32>
    %c1_95 = arith.constant 1 : index
    %c0_96 = arith.constant 0 : index
    %c0_97 = arith.constant 0 : index
    %189 = vector.load %arg6[%c1_95, %c0_96, %c0_97] : memref<2x1x96xf32, #tpu.memory_space<vmem>>, vector<1x1x96xf32>
    %190 = vector.shape_cast %189 : vector<1x1x96xf32> to vector<1x96xf32>
    %191 = vector.broadcast %190 : vector<1x96xf32> to vector<8x96xf32>
    %192 = arith.addf %188, %191 : vector<8x96xf32>
    %193 = vector.extract_strided_slice %192 {offsets = [0, 0], sizes = [8, 8], strides = [1, 1]} : vector<8x96xf32> to vector<8x8xf32>
    %194 = vector.extract_strided_slice %192 {offsets = [0, 32], sizes = [8, 8], strides = [1, 1]} : vector<8x96xf32> to vector<8x8xf32>
    %195 = vector.extract_strided_slice %192 {offsets = [0, 64], sizes = [8, 8], strides = [1, 1]} : vector<8x96xf32> to vector<8x8xf32>
    %cst_98 = arith.constant dense<0.000000e+00> : vector<8x8xf32>
    %196 = tpu.matmul %193, %194, %cst_98 {dimension_numbers = #tpu.dot_dimension_numbers<[1], [1], [0], [0], [0, 0, 1, 0], [], []>} : vector<8x8xf32>, vector<8x8xf32>, vector<8x8xf32> -> vector<8x8xf32>
    %cst_99 = arith.constant 0.353553385 : f32
    %197 = vector.broadcast %cst_99 : f32 to vector<8x8xf32>
    %198 = arith.mulf %196, %197 : vector<8x8xf32>
    %cst_100 = arith.constant 0.000000e+00 : f32
    %199 = vector.broadcast %cst_100 : f32 to vector<8x8xf32>
    %200 = arith.cmpf ogt, %12, %199 : vector<8x8xf32>
    %cst_101 = arith.constant -1.000000e+09 : f32
    %201 = vector.broadcast %cst_101 : f32 to vector<8x8xf32>
    %202 = arith.select %200, %198, %201 : vector<8x8xi1>, vector<8x8xf32>
    %cst_102 = arith.constant dense<0xFF800000> : vector<8xf32>
    %203 = vector.multi_reduction <maximumf>, %202, %cst_102 [1] : vector<8x8xf32> to vector<8xf32>
    %204 = vector.shape_cast %203 : vector<8xf32> to vector<8x1xf32>
    %205 = vector.broadcast %204 : vector<8x1xf32> to vector<8x8xf32>
    %206 = arith.subf %202, %205 : vector<8x8xf32>
    %207 = math.exp %206 : vector<8x8xf32>
    %cst_103 = arith.constant dense<0.000000e+00> : vector<8xf32>
    %208 = vector.multi_reduction <add>, %207, %cst_103 [1] : vector<8x8xf32> to vector<8xf32>
    %209 = vector.shape_cast %208 : vector<8xf32> to vector<8x1xf32>
    %210 = tpu.reciprocal %209 {approx = true} : vector<8x1xf32> -> vector<8x1xf32>
    %211 = vector.broadcast %210 : vector<8x1xf32> to vector<8x8xf32>
    %212 = arith.mulf %207, %211 : vector<8x8xf32>
    %cst_104 = arith.constant dense<0.000000e+00> : vector<8x8xf32>
    %213 = tpu.matmul %212, %195, %cst_104 {dimension_numbers = #tpu.dot_dimension_numbers<[1], [0], [0], [1], [0, 0, 1, 1], [], []>} : vector<8x8xf32>, vector<8x8xf32>, vector<8x8xf32> -> vector<8x8xf32>
    %214 = vector.extract_strided_slice %192 {offsets = [0, 8], sizes = [8, 8], strides = [1, 1]} : vector<8x96xf32> to vector<8x8xf32>
    %215 = vector.extract_strided_slice %192 {offsets = [0, 40], sizes = [8, 8], strides = [1, 1]} : vector<8x96xf32> to vector<8x8xf32>
    %216 = vector.extract_strided_slice %192 {offsets = [0, 72], sizes = [8, 8], strides = [1, 1]} : vector<8x96xf32> to vector<8x8xf32>
    %cst_105 = arith.constant dense<0.000000e+00> : vector<8x8xf32>
    %217 = tpu.matmul %214, %215, %cst_105 {dimension_numbers = #tpu.dot_dimension_numbers<[1], [1], [0], [0], [0, 0, 1, 0], [], []>} : vector<8x8xf32>, vector<8x8xf32>, vector<8x8xf32> -> vector<8x8xf32>
    %cst_106 = arith.constant 0.353553385 : f32
    %218 = vector.broadcast %cst_106 : f32 to vector<8x8xf32>
    %219 = arith.mulf %217, %218 : vector<8x8xf32>
    %cst_107 = arith.constant 0.000000e+00 : f32
    %220 = vector.broadcast %cst_107 : f32 to vector<8x8xf32>
    %221 = arith.cmpf ogt, %12, %220 : vector<8x8xf32>
    %cst_108 = arith.constant -1.000000e+09 : f32
    %222 = vector.broadcast %cst_108 : f32 to vector<8x8xf32>
    %223 = arith.select %221, %219, %222 : vector<8x8xi1>, vector<8x8xf32>
    %cst_109 = arith.constant dense<0xFF800000> : vector<8xf32>
    %224 = vector.multi_reduction <maximumf>, %223, %cst_109 [1] : vector<8x8xf32> to vector<8xf32>
    %225 = vector.shape_cast %224 : vector<8xf32> to vector<8x1xf32>
    %226 = vector.broadcast %225 : vector<8x1xf32> to vector<8x8xf32>
    %227 = arith.subf %223, %226 : vector<8x8xf32>
    %228 = math.exp %227 : vector<8x8xf32>
    %cst_110 = arith.constant dense<0.000000e+00> : vector<8xf32>
    %229 = vector.multi_reduction <add>, %228, %cst_110 [1] : vector<8x8xf32> to vector<8xf32>
    %230 = vector.shape_cast %229 : vector<8xf32> to vector<8x1xf32>
    %231 = tpu.reciprocal %230 {approx = true} : vector<8x1xf32> -> vector<8x1xf32>
    %232 = vector.broadcast %231 : vector<8x1xf32> to vector<8x8xf32>
    %233 = arith.mulf %228, %232 : vector<8x8xf32>
    %cst_111 = arith.constant dense<0.000000e+00> : vector<8x8xf32>
    %234 = tpu.matmul %233, %216, %cst_111 {dimension_numbers = #tpu.dot_dimension_numbers<[1], [0], [0], [1], [0, 0, 1, 1], [], []>} : vector<8x8xf32>, vector<8x8xf32>, vector<8x8xf32> -> vector<8x8xf32>
    %235 = vector.extract_strided_slice %192 {offsets = [0, 16], sizes = [8, 8], strides = [1, 1]} : vector<8x96xf32> to vector<8x8xf32>
    %236 = vector.extract_strided_slice %192 {offsets = [0, 48], sizes = [8, 8], strides = [1, 1]} : vector<8x96xf32> to vector<8x8xf32>
    %237 = vector.extract_strided_slice %192 {offsets = [0, 80], sizes = [8, 8], strides = [1, 1]} : vector<8x96xf32> to vector<8x8xf32>
    %cst_112 = arith.constant dense<0.000000e+00> : vector<8x8xf32>
    %238 = tpu.matmul %235, %236, %cst_112 {dimension_numbers = #tpu.dot_dimension_numbers<[1], [1], [0], [0], [0, 0, 1, 0], [], []>} : vector<8x8xf32>, vector<8x8xf32>, vector<8x8xf32> -> vector<8x8xf32>
    %cst_113 = arith.constant 0.353553385 : f32
    %239 = vector.broadcast %cst_113 : f32 to vector<8x8xf32>
    %240 = arith.mulf %238, %239 : vector<8x8xf32>
    %cst_114 = arith.constant 0.000000e+00 : f32
    %241 = vector.broadcast %cst_114 : f32 to vector<8x8xf32>
    %242 = arith.cmpf ogt, %12, %241 : vector<8x8xf32>
    %cst_115 = arith.constant -1.000000e+09 : f32
    %243 = vector.broadcast %cst_115 : f32 to vector<8x8xf32>
    %244 = arith.select %242, %240, %243 : vector<8x8xi1>, vector<8x8xf32>
    %cst_116 = arith.constant dense<0xFF800000> : vector<8xf32>
    %245 = vector.multi_reduction <maximumf>, %244, %cst_116 [1] : vector<8x8xf32> to vector<8xf32>
    %246 = vector.shape_cast %245 : vector<8xf32> to vector<8x1xf32>
    %247 = vector.broadcast %246 : vector<8x1xf32> to vector<8x8xf32>
    %248 = arith.subf %244, %247 : vector<8x8xf32>
    %249 = math.exp %248 : vector<8x8xf32>
    %cst_117 = arith.constant dense<0.000000e+00> : vector<8xf32>
    %250 = vector.multi_reduction <add>, %249, %cst_117 [1] : vector<8x8xf32> to vector<8xf32>
    %251 = vector.shape_cast %250 : vector<8xf32> to vector<8x1xf32>
    %252 = tpu.reciprocal %251 {approx = true} : vector<8x1xf32> -> vector<8x1xf32>
    %253 = vector.broadcast %252 : vector<8x1xf32> to vector<8x8xf32>
    %254 = arith.mulf %249, %253 : vector<8x8xf32>
    %cst_118 = arith.constant dense<0.000000e+00> : vector<8x8xf32>
    %255 = tpu.matmul %254, %237, %cst_118 {dimension_numbers = #tpu.dot_dimension_numbers<[1], [0], [0], [1], [0, 0, 1, 1], [], []>} : vector<8x8xf32>, vector<8x8xf32>, vector<8x8xf32> -> vector<8x8xf32>
    %256 = vector.extract_strided_slice %192 {offsets = [0, 24], sizes = [8, 8], strides = [1, 1]} : vector<8x96xf32> to vector<8x8xf32>
    %257 = vector.extract_strided_slice %192 {offsets = [0, 56], sizes = [8, 8], strides = [1, 1]} : vector<8x96xf32> to vector<8x8xf32>
    %258 = vector.extract_strided_slice %192 {offsets = [0, 88], sizes = [8, 8], strides = [1, 1]} : vector<8x96xf32> to vector<8x8xf32>
    %cst_119 = arith.constant dense<0.000000e+00> : vector<8x8xf32>
    %259 = tpu.matmul %256, %257, %cst_119 {dimension_numbers = #tpu.dot_dimension_numbers<[1], [1], [0], [0], [0, 0, 1, 0], [], []>} : vector<8x8xf32>, vector<8x8xf32>, vector<8x8xf32> -> vector<8x8xf32>
    %cst_120 = arith.constant 0.353553385 : f32
    %260 = vector.broadcast %cst_120 : f32 to vector<8x8xf32>
    %261 = arith.mulf %259, %260 : vector<8x8xf32>
    %cst_121 = arith.constant 0.000000e+00 : f32
    %262 = vector.broadcast %cst_121 : f32 to vector<8x8xf32>
    %263 = arith.cmpf ogt, %12, %262 : vector<8x8xf32>
    %cst_122 = arith.constant -1.000000e+09 : f32
    %264 = vector.broadcast %cst_122 : f32 to vector<8x8xf32>
    %265 = arith.select %263, %261, %264 : vector<8x8xi1>, vector<8x8xf32>
    %cst_123 = arith.constant dense<0xFF800000> : vector<8xf32>
    %266 = vector.multi_reduction <maximumf>, %265, %cst_123 [1] : vector<8x8xf32> to vector<8xf32>
    %267 = vector.shape_cast %266 : vector<8xf32> to vector<8x1xf32>
    %268 = vector.broadcast %267 : vector<8x1xf32> to vector<8x8xf32>
    %269 = arith.subf %265, %268 : vector<8x8xf32>
    %270 = math.exp %269 : vector<8x8xf32>
    %cst_124 = arith.constant dense<0.000000e+00> : vector<8xf32>
    %271 = vector.multi_reduction <add>, %270, %cst_124 [1] : vector<8x8xf32> to vector<8xf32>
    %272 = vector.shape_cast %271 : vector<8xf32> to vector<8x1xf32>
    %273 = tpu.reciprocal %272 {approx = true} : vector<8x1xf32> -> vector<8x1xf32>
    %274 = vector.broadcast %273 : vector<8x1xf32> to vector<8x8xf32>
    %275 = arith.mulf %270, %274 : vector<8x8xf32>
    %cst_125 = arith.constant dense<0.000000e+00> : vector<8x8xf32>
    %276 = tpu.matmul %275, %258, %cst_125 {dimension_numbers = #tpu.dot_dimension_numbers<[1], [0], [0], [1], [0, 0, 1, 1], [], []>} : vector<8x8xf32>, vector<8x8xf32>, vector<8x8xf32> -> vector<8x8xf32>
    %277 = tpu.concatenate %212, %233, %254, %275 in 0 : vector<8x8xf32>, vector<8x8xf32>, vector<8x8xf32>, vector<8x8xf32> -> vector<32x8xf32>
    %c0_126 = arith.constant 0 : index
    %c1_127 = arith.constant 1 : index
    %c0_128 = arith.constant 0 : index
    %c0_129 = arith.constant 0 : index
    %278 = vector.load %arg18[%c0_126, %c1_127, %c0_128, %c0_129] : memref<1x2x32x8xf32, #tpu.memory_space<vmem>>, vector<1x1x32x8xf32>
    %279 = vector.shape_cast %278 : vector<1x1x32x8xf32> to vector<32x8xf32>
    %280 = vector.shape_cast %277 : vector<32x8xf32> to vector<1x1x32x8xf32>
    tpu.vector_store %arg18[%c0_126, %c1_127, %c0_128, %c0_129], %280 {strides = array<i32>} : memref<1x2x32x8xf32, #tpu.memory_space<vmem>>, vector<1x1x32x8xf32>,
    %281 = tpu.concatenate %213, %234, %255, %276 in 1 : vector<8x8xf32>, vector<8x8xf32>, vector<8x8xf32>, vector<8x8xf32> -> vector<8x32xf32>
    %c1_130 = arith.constant 1 : index
    %c0_131 = arith.constant 0 : index
    %c0_132 = arith.constant 0 : index
    %282 = vector.load %arg7[%c1_130, %c0_131, %c0_132] : memref<2x32x32xf32, #tpu.memory_space<vmem>>, vector<1x32x32xf32>
    %283 = vector.shape_cast %282 : vector<1x32x32xf32> to vector<32x32xf32>
    %cst_133 = arith.constant dense<0.000000e+00> : vector<8x32xf32>
    %284 = tpu.matmul %281, %283, %cst_133 {dimension_numbers = #tpu.dot_dimension_numbers<[1], [0], [0], [1], [0, 0, 1, 1], [], []>} : vector<8x32xf32>, vector<32x32xf32>, vector<8x32xf32> -> vector<8x32xf32>
    %c1_134 = arith.constant 1 : index
    %c0_135 = arith.constant 0 : index
    %c0_136 = arith.constant 0 : index
    %285 = vector.load %arg8[%c1_134, %c0_135, %c0_136] : memref<2x1x32xf32, #tpu.memory_space<vmem>>, vector<1x1x32xf32>
    %286 = vector.shape_cast %285 : vector<1x1x32xf32> to vector<1x32xf32>
    %287 = vector.broadcast %286 : vector<1x32xf32> to vector<8x32xf32>
    %288 = arith.addf %284, %287 : vector<8x32xf32>
    %289 = arith.addf %288, %185 : vector<8x32xf32>
    %c1_137 = arith.constant 1 : index
    %c0_138 = arith.constant 0 : index
    %c0_139 = arith.constant 0 : index
    %290 = vector.load %arg9[%c1_137, %c0_138, %c0_139] : memref<2x1x32xf32, #tpu.memory_space<vmem>>, vector<1x1x32xf32>
    %291 = vector.shape_cast %290 : vector<1x1x32xf32> to vector<1x32xf32>
    %c1_140 = arith.constant 1 : index
    %c0_141 = arith.constant 0 : index
    %c0_142 = arith.constant 0 : index
    %292 = vector.load %arg10[%c1_140, %c0_141, %c0_142] : memref<2x1x32xf32, #tpu.memory_space<vmem>>, vector<1x1x32xf32>
    %293 = vector.shape_cast %292 : vector<1x1x32xf32> to vector<1x32xf32>
    %cst_143 = arith.constant dense<0.000000e+00> : vector<8xf32>
    %294 = vector.multi_reduction <add>, %289, %cst_143 [1] : vector<8x32xf32> to vector<8xf32>
    %295 = vector.shape_cast %294 : vector<8xf32> to vector<8x1xf32>
    %cst_144 = arith.constant 3.200000e+01 : f32
    %296 = vector.broadcast %cst_144 : f32 to vector<8x1xf32>
    %297 = arith.divf %295, %296 : vector<8x1xf32>
    %298 = vector.broadcast %297 : vector<8x1xf32> to vector<8x32xf32>
    %299 = arith.subf %289, %298 : vector<8x32xf32>
    %300 = arith.mulf %299, %299 : vector<8x32xf32>
    %cst_145 = arith.constant dense<0.000000e+00> : vector<8xf32>
    %301 = vector.multi_reduction <add>, %300, %cst_145 [1] : vector<8x32xf32> to vector<8xf32>
    %302 = vector.shape_cast %301 : vector<8xf32> to vector<8x1xf32>
    %cst_146 = arith.constant 3.200000e+01 : f32
    %303 = vector.broadcast %cst_146 : f32 to vector<8x1xf32>
    %304 = arith.divf %302, %303 : vector<8x1xf32>
    %305 = vector.broadcast %297 : vector<8x1xf32> to vector<8x32xf32>
    %306 = arith.subf %289, %305 : vector<8x32xf32>
    %cst_147 = arith.constant 9.99999997E-7 : f32
    %307 = vector.broadcast %cst_147 : f32 to vector<8x1xf32>
    %308 = arith.addf %304, %307 : vector<8x1xf32>
    %309 = math.rsqrt %308 : vector<8x1xf32>
    %310 = vector.broadcast %309 : vector<8x1xf32> to vector<8x32xf32>
    %311 = arith.mulf %306, %310 : vector<8x32xf32>
    %312 = vector.broadcast %291 : vector<1x32xf32> to vector<8x32xf32>
    %313 = arith.mulf %311, %312 : vector<8x32xf32>
    %314 = vector.broadcast %293 : vector<1x32xf32> to vector<8x32xf32>
    %315 = arith.addf %313, %314 : vector<8x32xf32>
    %c1_148 = arith.constant 1 : index
    %c0_149 = arith.constant 0 : index
    %c0_150 = arith.constant 0 : index
    %316 = vector.load %arg11[%c1_148, %c0_149, %c0_150] : memref<2x32x64xf32, #tpu.memory_space<vmem>>, vector<1x32x64xf32>
    %317 = vector.shape_cast %316 : vector<1x32x64xf32> to vector<32x64xf32>
    %cst_151 = arith.constant dense<0.000000e+00> : vector<8x64xf32>
    %318 = tpu.matmul %315, %317, %cst_151 {dimension_numbers = #tpu.dot_dimension_numbers<[1], [0], [0], [1], [0, 0, 1, 1], [], []>} : vector<8x32xf32>, vector<32x64xf32>, vector<8x64xf32> -> vector<8x64xf32>
    %c1_152 = arith.constant 1 : index
    %c0_153 = arith.constant 0 : index
    %c0_154 = arith.constant 0 : index
    %319 = vector.load %arg12[%c1_152, %c0_153, %c0_154] : memref<2x1x64xf32, #tpu.memory_space<vmem>>, vector<1x1x64xf32>
    %320 = vector.shape_cast %319 : vector<1x1x64xf32> to vector<1x64xf32>
    %321 = vector.broadcast %320 : vector<1x64xf32> to vector<8x64xf32>
    %322 = arith.addf %318, %321 : vector<8x64xf32>
    %cst_155 = arith.constant 0.000000e+00 : f32
    %323 = vector.broadcast %cst_155 : f32 to vector<8x64xf32>
    %324 = arith.maximumf %322, %323 : vector<8x64xf32>
    %c1_156 = arith.constant 1 : index
    %c0_157 = arith.constant 0 : index
    %c0_158 = arith.constant 0 : index
    %325 = vector.load %arg13[%c1_156, %c0_157, %c0_158] : memref<2x64x32xf32, #tpu.memory_space<vmem>>, vector<1x64x32xf32>
    %326 = vector.shape_cast %325 : vector<1x64x32xf32> to vector<64x32xf32>
    %cst_159 = arith.constant dense<0.000000e+00> : vector<8x32xf32>
    %327 = tpu.matmul %324, %326, %cst_159 {dimension_numbers = #tpu.dot_dimension_numbers<[1], [0], [0], [1], [0, 0, 1, 1], [], []>} : vector<8x64xf32>, vector<64x32xf32>, vector<8x32xf32> -> vector<8x32xf32>
    %c1_160 = arith.constant 1 : index
    %c0_161 = arith.constant 0 : index
    %c0_162 = arith.constant 0 : index
    %328 = vector.load %arg14[%c1_160, %c0_161, %c0_162] : memref<2x1x32xf32, #tpu.memory_space<vmem>>, vector<1x1x32xf32>
    %329 = vector.shape_cast %328 : vector<1x1x32xf32> to vector<1x32xf32>
    %330 = vector.broadcast %329 : vector<1x32xf32> to vector<8x32xf32>
    %331 = arith.addf %327, %330 : vector<8x32xf32>
    %332 = arith.addf %331, %315 : vector<8x32xf32>
    %c1_163 = arith.constant 1 : index
    %c0_164 = arith.constant 0 : index
    %c0_165 = arith.constant 0 : index
    %333 = vector.load %arg15[%c1_163, %c0_164, %c0_165] : memref<2x1x32xf32, #tpu.memory_space<vmem>>, vector<1x1x32xf32>
    %334 = vector.shape_cast %333 : vector<1x1x32xf32> to vector<1x32xf32>
    %c1_166 = arith.constant 1 : index
    %c0_167 = arith.constant 0 : index
    %c0_168 = arith.constant 0 : index
    %335 = vector.load %arg16[%c1_166, %c0_167, %c0_168] : memref<2x1x32xf32, #tpu.memory_space<vmem>>, vector<1x1x32xf32>
    %336 = vector.shape_cast %335 : vector<1x1x32xf32> to vector<1x32xf32>
    %cst_169 = arith.constant dense<0.000000e+00> : vector<8xf32>
    %337 = vector.multi_reduction <add>, %332, %cst_169 [1] : vector<8x32xf32> to vector<8xf32>
    %338 = vector.shape_cast %337 : vector<8xf32> to vector<8x1xf32>
    %cst_170 = arith.constant 3.200000e+01 : f32
    %339 = vector.broadcast %cst_170 : f32 to vector<8x1xf32>
    %340 = arith.divf %338, %339 : vector<8x1xf32>
    %341 = vector.broadcast %340 : vector<8x1xf32> to vector<8x32xf32>
    %342 = arith.subf %332, %341 : vector<8x32xf32>
    %343 = arith.mulf %342, %342 : vector<8x32xf32>
    %cst_171 = arith.constant dense<0.000000e+00> : vector<8xf32>
    %344 = vector.multi_reduction <add>, %343, %cst_171 [1] : vector<8x32xf32> to vector<8xf32>
    %345 = vector.shape_cast %344 : vector<8xf32> to vector<8x1xf32>
    %cst_172 = arith.constant 3.200000e+01 : f32
    %346 = vector.broadcast %cst_172 : f32 to vector<8x1xf32>
    %347 = arith.divf %345, %346 : vector<8x1xf32>
    %348 = vector.broadcast %340 : vector<8x1xf32> to vector<8x32xf32>
    %349 = arith.subf %332, %348 : vector<8x32xf32>
    %cst_173 = arith.constant 9.99999997E-7 : f32
    %350 = vector.broadcast %cst_173 : f32 to vector<8x1xf32>
    %351 = arith.addf %347, %350 : vector<8x1xf32>
    %352 = math.rsqrt %351 : vector<8x1xf32>
    %353 = vector.broadcast %352 : vector<8x1xf32> to vector<8x32xf32>
    %354 = arith.mulf %349, %353 : vector<8x32xf32>
    %355 = vector.broadcast %334 : vector<1x32xf32> to vector<8x32xf32>
    %356 = arith.mulf %354, %355 : vector<8x32xf32>
    %357 = vector.broadcast %336 : vector<1x32xf32> to vector<8x32xf32>
    %358 = arith.addf %356, %357 : vector<8x32xf32>
    %c0_174 = arith.constant 0 : index
    %c0_175 = arith.constant 0 : index
    %c0_176 = arith.constant 0 : index
    %359 = vector.load %arg17[%c0_174, %c0_175, %c0_176] : memref<1x8x32xf32, #tpu.memory_space<vmem>>, vector<1x8x32xf32>
    %360 = vector.shape_cast %359 : vector<1x8x32xf32> to vector<8x32xf32>
    %361 = vector.shape_cast %358 : vector<8x32xf32> to vector<1x8x32xf32>
    tpu.vector_store %arg17[%c0_174, %c0_175, %c0_176], %361 {strides = array<i32>} : memref<1x8x32xf32, #tpu.memory_space<vmem>>, vector<1x8x32xf32>,
    return
  }
  func.func @transform_0(%arg0: i32) -> (i32, i32, i32) {
    %c0_i32 = arith.constant 0 : i32
    %c0_i32_0 = arith.constant 0 : i32
    %c0_i32_1 = arith.constant 0 : i32
    return %arg0, %c0_i32, %c0_i32_0 : i32, i32, i32
  }
  func.func @transform_1(%arg0: i32) -> (i32, i32) {
    %c0_i32 = arith.constant 0 : i32
    %c0_i32_0 = arith.constant 0 : i32
    %c0_i32_1 = arith.constant 0 : i32
    return %c0_i32, %c0_i32_0 : i32, i32
  }
  func.func @transform_2(%arg0: i32) -> (i32, i32) {
    %c0_i32 = arith.constant 0 : i32
    %c0_i32_0 = arith.constant 0 : i32
    %c0_i32_1 = arith.constant 0 : i32
    return %c0_i32, %c0_i32_0 : i32, i32
  }
  func.func @transform_3(%arg0: i32) -> (i32, i32, i32) {
    %c0_i32 = arith.constant 0 : i32
    %c0_i32_0 = arith.constant 0 : i32
    %c0_i32_1 = arith.constant 0 : i32
    return %arg0, %c0_i32, %c0_i32_0 : i32, i32, i32
  }
  func.func @transform_4(%arg0: i32) -> (i32, i32, i32) {
    %c0_i32 = arith.constant 0 : i32
    %c0_i32_0 = arith.constant 0 : i32
    %c0_i32_1 = arith.constant 0 : i32
    %c0_i32_2 = arith.constant 0 : i32
    return %c0_i32, %c0_i32_0, %c0_i32_1 : i32, i32, i32
  }
  func.func @transform_5(%arg0: i32) -> (i32, i32, i32) {
    %c0_i32 = arith.constant 0 : i32
    %c0_i32_0 = arith.constant 0 : i32
    %c0_i32_1 = arith.constant 0 : i32
    %c0_i32_2 = arith.constant 0 : i32
    return %c0_i32, %c0_i32_0, %c0_i32_1 : i32, i32, i32
  }
  func.func @transform_6(%arg0: i32) -> (i32, i32, i32) {
    %c0_i32 = arith.constant 0 : i32
    %c0_i32_0 = arith.constant 0 : i32
    %c0_i32_1 = arith.constant 0 : i32
    %c0_i32_2 = arith.constant 0 : i32
    return %c0_i32, %c0_i32_0, %c0_i32_1 : i32, i32, i32
  }
  func.func @transform_7(%arg0: i32) -> (i32, i32, i32) {
    %c0_i32 = arith.constant 0 : i32
    %c0_i32_0 = arith.constant 0 : i32
    %c0_i32_1 = arith.constant 0 : i32
    %c0_i32_2 = arith.constant 0 : i32
    return %c0_i32, %c0_i32_0, %c0_i32_1 : i32, i32, i32
  }
  func.func @transform_8(%arg0: i32) -> (i32, i32, i32) {
    %c0_i32 = arith.constant 0 : i32
    %c0_i32_0 = arith.constant 0 : i32
    %c0_i32_1 = arith.constant 0 : i32
    %c0_i32_2 = arith.constant 0 : i32
    return %c0_i32, %c0_i32_0, %c0_i32_1 : i32, i32, i32
  }
  func.func @transform_9(%arg0: i32) -> (i32, i32, i32) {
    %c0_i32 = arith.constant 0 : i32
    %c0_i32_0 = arith.constant 0 : i32
    %c0_i32_1 = arith.constant 0 : i32
    %c0_i32_2 = arith.constant 0 : i32
    return %c0_i32, %c0_i32_0, %c0_i32_1 : i32, i32, i32
  }
  func.func @transform_10(%arg0: i32) -> (i32, i32, i32) {
    %c0_i32 = arith.constant 0 : i32
    %c0_i32_0 = arith.constant 0 : i32
    %c0_i32_1 = arith.constant 0 : i32
    %c0_i32_2 = arith.constant 0 : i32
    return %c0_i32, %c0_i32_0, %c0_i32_1 : i32, i32, i32
  }
  func.func @transform_11(%arg0: i32) -> (i32, i32, i32) {
    %c0_i32 = arith.constant 0 : i32
    %c0_i32_0 = arith.constant 0 : i32
    %c0_i32_1 = arith.constant 0 : i32
    %c0_i32_2 = arith.constant 0 : i32
    return %c0_i32, %c0_i32_0, %c0_i32_1 : i32, i32, i32
  }
  func.func @transform_12(%arg0: i32) -> (i32, i32, i32) {
    %c0_i32 = arith.constant 0 : i32
    %c0_i32_0 = arith.constant 0 : i32
    %c0_i32_1 = arith.constant 0 : i32
    %c0_i32_2 = arith.constant 0 : i32
    return %c0_i32, %c0_i32_0, %c0_i32_1 : i32, i32, i32
  }
  func.func @transform_13(%arg0: i32) -> (i32, i32, i32) {
    %c0_i32 = arith.constant 0 : i32
    %c0_i32_0 = arith.constant 0 : i32
    %c0_i32_1 = arith.constant 0 : i32
    %c0_i32_2 = arith.constant 0 : i32
    return %c0_i32, %c0_i32_0, %c0_i32_1 : i32, i32, i32
  }
  func.func @transform_14(%arg0: i32) -> (i32, i32, i32) {
    %c0_i32 = arith.constant 0 : i32
    %c0_i32_0 = arith.constant 0 : i32
    %c0_i32_1 = arith.constant 0 : i32
    %c0_i32_2 = arith.constant 0 : i32
    return %c0_i32, %c0_i32_0, %c0_i32_1 : i32, i32, i32
  }
  func.func @transform_15(%arg0: i32) -> (i32, i32, i32) {
    %c0_i32 = arith.constant 0 : i32
    %c0_i32_0 = arith.constant 0 : i32
    %c0_i32_1 = arith.constant 0 : i32
    %c0_i32_2 = arith.constant 0 : i32
    return %c0_i32, %c0_i32_0, %c0_i32_1 : i32, i32, i32
  }
  func.func @transform_16(%arg0: i32) -> (i32, i32, i32) {
    %c0_i32 = arith.constant 0 : i32
    %c0_i32_0 = arith.constant 0 : i32
    %c0_i32_1 = arith.constant 0 : i32
    return %arg0, %c0_i32, %c0_i32_0 : i32, i32, i32
  }
  func.func @transform_17(%arg0: i32) -> (i32, i32, i32, i32) {
    %c0_i32 = arith.constant 0 : i32
    %c0_i32_0 = arith.constant 0 : i32
    %c0_i32_1 = arith.constant 0 : i32
    %c0_i32_2 = arith.constant 0 : i32
    return %arg0, %c0_i32, %c0_i32_0, %c0_i32_1 : i32, i32, i32, i32
  }
}

</mosaic_0001>

<bundles_post_ra>
// kernel: encoder_forward.1
= control target key start
LH: loop header
LB: loop body
LE: loop exit
PB: predicated region body
PF: predicated region fallthrough
CT: control target
= control target key end

     0   :  { %s4959_s0 = inlined_call_operand.vmem [shape: s32[2,8,1], index: 0, kind: input, shape index: {}]   ;;  %s4960_s1 = inlined_call_operand.hbm [shape: f32[16,32], index: 1, kind: input, shape index: {}]   ;;  %s4961_s2 = inlined_call_operand.vmem [shape: f32[8,32], index: 2, kind: input, shape index: {}]   ;;  %s4962_s3 = inlined_call_operand.vmem [shape: f32[2,8,8], index: 3, kind: input, shape index: {}]   ;;  %s4963_s4 = inlined_call_operand.vmem [shape: f32[2,32,96], index: 4, kind: input, shape index: {}]   ;;  %s4964_s5 = inlined_call_operand.vmem [shape: f32[2,1,96], index: 5, kind: input, shape index: {}]   ;;  %s4965_s6 = inlined_call_operand.vmem [shape: f32[2,32,32], index: 6, kind: input, shape index: {}]   ;;  %s4966_s7 = inlined_call_operand.hbm [shape: f32[2,1,32], index: 7, kind: input, shape index: {}]   ;;  %s4967_s8 = inlined_call_operand.hbm [shape: f32[2,1,32], index: 8, kind: input, shape index: {}]   ;;  %s4968_s9 = inlined_call_operand.hbm [shape: f32[2,1,32], index: 9, kind: input, shape index: {}]   ;;  %s4969_s10 = inlined_call_operand.vmem [shape: f32[2,32,64], index: 10, kind: input, shape index: {}]   ;;  %s4970_s11 = inlined_call_operand.hbm [shape: f32[2,1,64], index: 11, kind: input, shape index: {}]   ;;  %s4971_s12 = inlined_call_operand.vmem [shape: f32[2,64,32], index: 12, kind: input, shape index: {}]   ;;  %s4972_s13 = inlined_call_operand.hbm [shape: f32[2,1,32], index: 13, kind: input, shape index: {}]   ;;  %s4973_s14 = inlined_call_operand.hbm [shape: f32[2,1,32], index: 14, kind: input, shape index: {}]   ;;  %s4974_s15 = inlined_call_operand.hbm [shape: f32[2,1,32], index: 15, kind: input, shape index: {}]   ;;  %s4975_s16 = inlined_call_operand.hbm [shape: f32[2,8,32], index: 16, kind: output, shape index: {0}]   ;;  %s4976_s17 = inlined_call_operand.vmem [shape: f32[2,2,32,8], index: 17, kind: output, shape index: {1}]  }
   0x1   :  { %5006 = sst [smem:[#allocation31_spill]] %s4959_s0 }
   0x2   :  { %5007 = sst [smem:[#allocation32_spill]] %s4960_s1 }
   0x3   :  { %5008 = sst [smem:[#allocation33_spill]] %s4966_s7 }
   0x4   :  { %5009 = sst [smem:[#allocation34_spill]] %s4969_s10 }
   0x5   :  { %5010 = sst [smem:[#allocation35_spill]] %s4971_s12 }
   0x6   :  { %5011 = sst [smem:[#allocation36_spill]] %s4975_s16 }
   0x7   :  { %23 = vsyncpa [#allocation3], 0 }
   0x8   :  { %24 = vsyncpa [#allocation6], 0 }
   0x9   :  { %25 = vsyncpa [#allocation9], 0 }
   0xa   :  { %26 = vsyncpa [#allocation12], 0 }
   0xb   :  { %27 = vsyncpa [#allocation15], 0 }
   0xc   :  { %28 = vsyncpa [#allocation4], 0 }
   0xd   :  { %30 = vsyncpa [#allocation4 + $0x1], 0  ;;  %s4223_s24 = smov 0   ;;  %s4225_s25 = smov 0  }
   0xe   :  { %s4227_s26 = smov 0   ;;  %s4229_s27 = smov 0  }
   0xf LB: > { %5012 = sst [smem:[#allocation23_spill]] %s4088_s24  ;;  %s4244_s28 = sadd.s32 4294967295, %s4100_s27   ;;  %s4100_s27 = sphi %s4229_s27, %s5060_s27   ;;  %s4096_s26 = sphi %s4227_s26, %s5063_s26   ;;  %s4092_s25 = sphi %s4225_s25, %s5062_s25   ;;  %s4088_s24 = sphi %s4223_s24, %s5061_s24  }
  0x10   : > { %5013 = sst [smem:[#allocation24_spill]] %s4092_s25  ;;  %s3169_s29 = sadd.s32 4294967294, %s4100_s27  }
  0x11   : > { %5014 = sst [smem:[#allocation25_spill]] %s4096_s26  ;;  %s4248_s0 = sadd.s32 1, %s4100_s27  }
  0x12   : > { %5015 = sst [smem:[#allocation26_spill]] %s4100_s27  ;;  %s389_s30 = sadd.s32 1, %s4096_s26 }
  0x13   : > { %5016 = sst [smem:[#allocation27_spill]] %s4248_s0  ;;  %s386_s18 = ssub.s32 %s4100_s27, %s4248_s0 }
  0x14   : > { %p399_p0 = scmp.ne.s32.totalorder %s4096_s26, %s4092_s25  ;;  %p387_p1 = scmp.eq.s32.totalorder %s386_s18, 0 }
  0x15   : > { %p400_p2 = scmp.eq.s32.totalorder %s4244_s28, 1  ;;  %p405_p3 = scmp.ne.s32.totalorder %s4092_s25, %s4088_s24 }
  0x16   : > { %p406_p4 = scmp.eq.s32.totalorder %s3169_s29, 1  ;;  %p3170_p7 = scmp.ge.s32.totalorder %s4100_s27, 1 }
  0x17   : > { %s4259_s19 = scalar_select %p387_p1, %s4096_s26, %s389_s30  }
  0x18   : > { %p4261_p5 = por %p400_p2, %p399_p0  ;;  %p4265_p6 = por %p406_p4, %p405_p3 }
  0x19   : > { %5017 = sst [smem:[#allocation28_spill]] %s4259_s19  ;;  %p439_p8 = scmp.lt.s32.totalorder %s4100_s27, 3 }
  0x1a   : > { %s5018_s1 = scalar_select %p4261_p5, 1, 0 }
  0x1b   : > { %s5020_s20 = scalar_select %p4265_p6, 1, 0 }
  0x1c   : > { %5019 = sst [smem:[#allocation29_spill]] %s5018_s1  ;;  %p4985_p9 = scmp.eq.s32.totalorder %s4244_s28, 0 }
  0x1d   : > { %5021 = sst [smem:[#allocation30_spill]] %s5020_s20  ;;  %p4272_p10 = pnand %p3170_p7, %p439_p8 }
  0x1e   : > { %s4102_s22 = smov [#allocation5]   ;;  %s4103_s30 = smov [#allocation8]  }
  0x1f   : > { %s5022_s21 = scalar_select %p4272_p10, 1, 0 }
  0x20   : > { %s476_s23 = sshll.u32 %s4102_s22, 4  ;;  %p3645_p11 = pneg %p4272_p10  ;;  %s4278_s23 = int_to_ptr.vmem [resolvable:$true] %s476_s23 }
  0x21   : > { %s502_s18 = sshll.u32 %s4103_s30, 4  ;;  %s4104_s19 = smov [#allocation11]   ;;  %s4286_s18 = int_to_ptr.vmem [resolvable:$true] %s502_s18 }
  0x22   : > { %p4282_p12 = pnand %p4985_p9, %p3645_p11  ;;  %s4288_s26 = sshll.u32 %s4104_s19, 4  ;;  %s535_s26 = int_to_ptr.vmem [resolvable:$true] %s4288_s26 }
  0x23   : > { %s5024_s7 = sld [smem:[#allocation33_spill]] }
  0x24   : > { %p4298_p0 = pneg %p4282_p12 }
  0x29   : > { %s3794_s22 = scalar_lea.hbm %s5024_s7, 32 }
  0x2a   : > { %p3795_p13 = scmp.ne.s32.totalorder %s5024_s7, %s3794_s22  ;;  %p3801_p3 = scmp.lt.u32.totalorder %s3794_s22, %s5024_s7 }
  0x2c   : > { %p3797_p1 = pnand %p4298_p0, %p3795_p13 }
  0x2e   : > { %p3798_p2 = pneg %p3797_p1 }
  0x30   : > { %p3803_p4 = pnand %p3801_p3, %p3798_p2 }
  0x32   : > { %3806 = shalt.err (!%p3803_p4)
}
  0x33   : > { %s3807_s24 = scalar_lea.vmem %s4278_s23, 32  ;;  %p3815_p9 = scmp.lt.s32.totalorder %s4278_s23, %s4278_s23 }
  0x34   : > { %p3808_p7 = scmp.ne.s32.totalorder %s4278_s23, %s3807_s24  ;;  %p3816_p6 = scmp.lt.s32.totalorder %s3807_s24, %s3807_s24 }
  0x36   : > { %p3810_p8 = pnand %p3808_p7, %p4298_p0  ;;  %p3817_p13 = por %p3816_p6, %p3815_p9 }
  0x38   : > { %p3811_p11 = pneg %p3810_p8 }
  0x3a   : > { %p3818_p1 = pnand %p3817_p13, %p3811_p11 }
  0x3c   : > { %3821 = shalt.err (!%p3818_p1)
}
  0x3d   : > { %s4993_s27 = smov 16   ;;  %s4995_s0 = smov 1  }
  0x3e   : > { %3651 = dma.hbm_to_vmem [thread:$0]  (!%p4282_p12), %s5024_s7, 32, %s4278_s23, [#allocation6], %s4993_s27, %s4993_s27, %s4995_s0  }
  0x3f   : > { %s3822_s24 = scalar_lea.hbm %s4968_s9, 32 }
  0x40   : > { %p3823_p6 = scmp.ne.s32.totalorder %s4968_s9, %s3822_s24  ;;  %p3829_p3 = scmp.lt.u32.totalorder %s3822_s24, %s4968_s9 }
  0x42   : > { %p3825_p9 = pnand %p3823_p6, %p4298_p0 }
  0x44   : > { %p3826_p2 = pneg %p3825_p9 }
  0x46   : > { %p3831_p4 = pnand %p3829_p3, %p3826_p2 }
  0x48   : > { %3834 = shalt.err (!%p3831_p4)
}
  0x49   : > { %s3835_s23 = scalar_lea.vmem %s4286_s18, 32  ;;  %p3843_p13 = scmp.lt.s32.totalorder %s4286_s18, %s4286_s18 }
  0x4a   : > { %p3836_p7 = scmp.ne.s32.totalorder %s4286_s18, %s3835_s23  ;;  %p3844_p1 = scmp.lt.s32.totalorder %s3835_s23, %s3835_s23 }
  0x4c   : > { %p3838_p8 = pnand %p3836_p7, %p4298_p0  ;;  %p3845_p6 = por %p3844_p1, %p3843_p13 }
  0x4e   : > { %p3839_p11 = pneg %p3838_p8 }
  0x50   : > { %p3846_p9 = pnand %p3845_p6, %p3839_p11 }
  0x52   : > { %3849 = shalt.err (!%p3846_p9)
}
  0x53   : > { %3657 = dma.hbm_to_vmem [thread:$0]  (!%p4282_p12), %s4968_s9, 32, %s4286_s18, [#allocation9], %s4993_s27, %s4993_s27, %s4995_s0  }
  0x54   : > { %s3850_s20 = scalar_lea.hbm %s4972_s13, 32 }
  0x55   : > { %p3851_p2 = scmp.ne.s32.totalorder %s4972_s13, %s3850_s20  ;;  %p3857_p7 = scmp.lt.u32.totalorder %s3850_s20, %s4972_s13 }
  0x57   : > { %p3853_p3 = pnand %p3851_p2, %p4298_p0 }
  0x59   : > { %p3854_p4 = pneg %p3853_p3 }
  0x5b   : > { %p3859_p8 = pnand %p3857_p7, %p3854_p4 }
  0x5d   : > { %3862 = shalt.err (!%p3859_p8)
}
  0x5e   : > { %s3863_s23 = scalar_lea.vmem %s535_s26, 32  ;;  %p3871_p6 = scmp.lt.s32.totalorder %s535_s26, %s535_s26 }
  0x5f   : > { %p3864_p11 = scmp.ne.s32.totalorder %s535_s26, %s3863_s23  ;;  %p3872_p9 = scmp.lt.s32.totalorder %s3863_s23, %s3863_s23 }
  0x61   : > { %p3866_p13 = pnand %p3864_p11, %p4298_p0  ;;  %p3873_p5 = por %p3872_p9, %p3871_p6 }
  0x63   : > { %p3867_p1 = pneg %p3866_p13 }
  0x65   : > { %p3874_p10 = pnand %p3873_p5, %p3867_p1 }
  0x67   : > { %3877 = shalt.err (!%p3874_p10)
}
  0x68   : > { %3663 = dma.hbm_to_vmem [thread:$0]  (!%p4282_p12), %s4972_s13, 32, %s535_s26, [#allocation12], %s4993_s27, %s4993_s27, %s4995_s0  }
  0x69   : > { %s4107_s12 = smov [#allocation2]   ;;  %s5026_s22 = sld [smem:[#allocation32_spill]] }
  0x6a   : > { %s451_s25 = sshll.u32 %s4107_s12, 4  ;;  %s452_s25 = int_to_ptr.vmem [resolvable:$true] %s451_s25 }
  0x6f   : > { %s3878_s30 = scalar_lea.hbm %s5026_s22, 256 }
  0x70   : > { %p3879_p5 = scmp.ne.s32.totalorder %s5026_s22, %s3878_s30  ;;  %p3885_p3 = scmp.lt.u32.totalorder %s3878_s30, %s5026_s22 }
  0x72   : > { %p3881_p10 = pnand %p3879_p5, %p4298_p0 }
  0x74   : > { %p3882_p2 = pneg %p3881_p10 }
  0x76   : > { %p3887_p4 = pnand %p3885_p3, %p3882_p2 }
  0x78   : > { %3890 = shalt.err (!%p3887_p4)
}
  0x79   : > { %s3891_s26 = scalar_lea.vmem %s452_s25, 256  ;;  %p3899_p13 = scmp.lt.s32.totalorder %s452_s25, %s452_s25 }
  0x7a   : > { %p3892_p7 = scmp.ne.s32.totalorder %s452_s25, %s3891_s26  ;;  %p3900_p1 = scmp.lt.s32.totalorder %s3891_s26, %s3891_s26 }
  0x7c   : > { %p3894_p8 = pnand %p3892_p7, %p4298_p0  ;;  %p3901_p6 = por %p3900_p1, %p3899_p13 }
  0x7e   : > { %p3895_p11 = pneg %p3894_p8 }
  0x80   : > { %p3902_p9 = pnand %p3901_p6, %p3895_p11 }
  0x82   : > { %3905 = shalt.err (!%p3902_p9)
}
  0x83   : > { %s4108_s18 = smov 128   ;;  %s4109_s10 = smov 8  }
  0x84   : > { %3648 = dma.hbm_to_vmem [thread:$0]  (!%p4282_p12), %s5026_s22, 256, %s452_s25, [#allocation3], %s4108_s18, %s4108_s18, %s4109_s10  }
  0x85   : > { %s4110_s1 = smov [#allocation7]   ;;  %s4111_s30 = smov [#allocation10]  }
  0x86   : > { %s489_s20 = sshll.u32 %s4110_s1, 4  ;;  %s518_s19 = sshll.u32 %s4111_s30, 4  ;;  %s490_s20 = int_to_ptr.vmem [resolvable:$true] %s489_s20  ;;  %s4388_s19 = int_to_ptr.vmem [resolvable:$true] %s518_s19 }
  0x87   : > { %s3906_s26 = scalar_lea.hbm %s4967_s8, 32 }
  0x88   : > { %p3907_p5 = scmp.ne.s32.totalorder %s4967_s8, %s3906_s26  ;;  %p3913_p3 = scmp.lt.u32.totalorder %s3906_s26, %s4967_s8 }
  0x8a   : > { %p3909_p10 = pnand %p3907_p5, %p4298_p0 }
  0x8c   : > { %p3910_p2 = pneg %p3909_p10 }
  0x8e   : > { %p3915_p4 = pnand %p3913_p3, %p3910_p2 }
  0x90   : > { %3918 = shalt.err (!%p3915_p4)
}
  0x91   : > { %s3919_s18 = scalar_lea.vmem %s490_s20, 32  ;;  %p3927_p13 = scmp.lt.s32.totalorder %s490_s20, %s490_s20 }
  0x92   : > { %p3920_p7 = scmp.ne.s32.totalorder %s490_s20, %s3919_s18  ;;  %p3928_p1 = scmp.lt.s32.totalorder %s3919_s18, %s3919_s18 }
  0x94   : > { %p3922_p8 = pnand %p3920_p7, %p4298_p0  ;;  %p3929_p6 = por %p3928_p1, %p3927_p13 }
  0x96   : > { %p3923_p11 = pneg %p3922_p8 }
  0x98   : > { %p3930_p9 = pnand %p3929_p6, %p3923_p11 }
  0x9a   : > { %3933 = shalt.err (!%p3930_p9)
}
  0x9b   : > { %s5027_s27 = smov 1   ;;  %s5028_s0 = smov 16  }
  0x9c   : > { %3654 = dma.hbm_to_vmem [thread:$0]  (!%p4282_p12), %s4967_s8, 32, %s490_s20, [#allocation6], %s5028_s0, %s5028_s0, %s5027_s27  }
  0x9d   : > { %s3934_s24 = scalar_lea.hbm %s4970_s11, 32 }
  0x9e   : > { %p3935_p5 = scmp.ne.s32.totalorder %s4970_s11, %s3934_s24  ;;  %p3941_p3 = scmp.lt.u32.totalorder %s3934_s24, %s4970_s11 }
  0xa0   : > { %p3937_p10 = pnand %p3935_p5, %p4298_p0 }
  0xa2   : > { %p3938_p2 = pneg %p3937_p10 }
  0xa4   : > { %p3943_p4 = pnand %p3941_p3, %p3938_p2 }
  0xa6   : > { %3946 = shalt.err (!%p3943_p4)
}
  0xa7   : > { %s3947_s20 = scalar_lea.vmem %s4388_s19, 32  ;;  %p3955_p13 = scmp.lt.s32.totalorder %s4388_s19, %s4388_s19 }
  0xa8   : > { %p3948_p7 = scmp.ne.s32.totalorder %s4388_s19, %s3947_s20  ;;  %p3956_p1 = scmp.lt.s32.totalorder %s3947_s20, %s3947_s20 }
  0xaa   : > { %p3950_p8 = pnand %p3948_p7, %p4298_p0  ;;  %p3957_p6 = por %p3956_p1, %p3955_p13 }
  0xac   : > { %p3951_p11 = pneg %p3950_p8 }
  0xae   : > { %p3958_p9 = pnand %p3957_p6, %p3951_p11 }
  0xb0   : > { %3961 = shalt.err (!%p3958_p9)
}
  0xb1   : > { %3660 = dma.hbm_to_vmem [thread:$0]  (!%p4282_p12), %s4970_s11, 32, %s4388_s19, [#allocation9], %s5028_s0, %s5028_s0, %s5027_s27  }
  0xb2   : > { %s4112_s12 = smov [#allocation13]   ;;  %s4113_s30 = smov [#allocation14]  }
  0xb3   : > { %s547_s1 = sshll.u32 %s4112_s12, 4  ;;  %s560_s24 = sshll.u32 %s4113_s30, 4  ;;  %s548_s1 = int_to_ptr.vmem [resolvable:$true] %s547_s1  ;;  %s4437_s24 = int_to_ptr.vmem [resolvable:$true] %s560_s24 }
  0xb4   : > { %s3962_s7 = scalar_lea.hbm %s4973_s14, 32 }
  0xb5   : > { %p3963_p5 = scmp.ne.s32.totalorder %s4973_s14, %s3962_s7  ;;  %p3969_p3 = scmp.lt.u32.totalorder %s3962_s7, %s4973_s14 }
  0xb7   : > { %p3965_p10 = pnand %p3963_p5, %p4298_p0 }
  0xb9   : > { %p3966_p2 = pneg %p3965_p10 }
  0xbb   : > { %p3971_p4 = pnand %p3969_p3, %p3966_p2 }
  0xbd   : > { %3974 = shalt.err (!%p3971_p4)
}
  0xbe   : > { %s3975_s10 = scalar_lea.vmem %s548_s1, 32  ;;  %p3983_p13 = scmp.lt.s32.totalorder %s548_s1, %s548_s1 }
  0xbf   : > { %p3976_p7 = scmp.ne.s32.totalorder %s548_s1, %s3975_s10  ;;  %p3984_p1 = scmp.lt.s32.totalorder %s3975_s10, %s3975_s10 }
  0xc1   : > { %p3978_p8 = pnand %p3976_p7, %p4298_p0  ;;  %p3985_p6 = por %p3984_p1, %p3983_p13 }
  0xc3   : > { %p3979_p11 = pneg %p3978_p8 }
  0xc5   : > { %p3986_p9 = pnand %p3985_p6, %p3979_p11 }
  0xc7   : > { %3989 = shalt.err (!%p3986_p9)
}
  0xc8   : > { %3666 = dma.hbm_to_vmem [thread:$0]  (!%p4282_p12), %s4973_s14, 32, %s548_s1, [#allocation12], %s5028_s0, %s5028_s0, %s5027_s27  }
  0xc9   : > { %s3990_s7 = scalar_lea.hbm %s4974_s15, 32 }
  0xca   : > { %p3991_p5 = scmp.ne.s32.totalorder %s4974_s15, %s3990_s7  ;;  %p3997_p3 = scmp.lt.u32.totalorder %s3990_s7, %s4974_s15 }
  0xcc   : > { %p3993_p10 = pnand %p3991_p5, %p4298_p0 }
  0xce   : > { %p3994_p2 = pneg %p3993_p10 }
  0xd0   : > { %p3999_p4 = pnand %p3997_p3, %p3994_p2 }
  0xd2   : > { %4002 = shalt.err (!%p3999_p4)
}
  0xd3   : > { %s4003_s1 = scalar_lea.vmem %s4437_s24, 32  ;;  %p4011_p13 = scmp.lt.s32.totalorder %s4437_s24, %s4437_s24 }
  0xd4   : > { %p4004_p7 = scmp.ne.s32.totalorder %s4437_s24, %s4003_s1  ;;  %p4012_p1 = scmp.lt.s32.totalorder %s4003_s1, %s4003_s1 }
  0xd6   : > { %p4006_p8 = pnand %p4004_p7, %p4298_p0  ;;  %p4013_p6 = por %p4012_p1, %p4011_p13 }
  0xd8   : > { %p4007_p11 = pneg %p4006_p8 }
  0xda   : > { %p4014_p9 = pnand %p4013_p6, %p4007_p11 }
  0xdc   : > { %4017 = shalt.err (!%p4014_p9)
}
  0xdd   : > { %3669 = dma.hbm_to_vmem [thread:$0]  (!%p4282_p12), %s4974_s15, 32, %s4437_s24, [#allocation15], %s5028_s0, %s5028_s0, %s5027_s27  }
  0xde   : > { %p5029_p5 = scmp.ne.s32.totalorder %s5022_s21, 0 }
  0xdf   : > { %p5030_p0 = scmp.eq.s32.totalorder (!%p5029_p5), %s4244_s28, 0 }
  0xe0   : > { %590 = sbr.rel (%p5029_p5) target bundleno = 6134 (0x17f6), region = 84 }
  0xe7   : > { %4063 = dma.done.wait (%p5030_p0), [#allocation3], 256   ;;  %p5031_p10 = pmov %p5030_p0 }
  0xe8   : > { %p5032_p2 = pmov %p5030_p0 }
  0xe9   : > { %4065 = vsyncadd (%p5031_p10), [#allocation3], 4294967040 }
  0xea   : > { %4067 = dma.done.wait (%p5032_p2), [#allocation6], 64   ;;  %p5033_p3 = pmov %p5030_p0 }
  0xeb   : > { %p5034_p4 = pmov %p5030_p0 }
  0xec   : > { %4069 = vsyncadd (%p5033_p3), [#allocation6], 4294967232 }
  0xed   : > { %4071 = dma.done.wait (%p5034_p4), [#allocation9], 64   ;;  %p5035_p12 = pmov %p5030_p0 }
  0xee   : > { %p5036_p7 = pmov %p5030_p0 }
  0xef   : > { %4073 = vsyncadd (%p5035_p12), [#allocation9], 4294967232 }
  0xf0   : > { %4075 = dma.done.wait (%p5036_p7), [#allocation12], 64   ;;  %p5037_p8 = pmov %p5030_p0 }
  0xf1   : > { %p5038_p11 = pmov %p5030_p0 }
  0xf2   : > { %4077 = vsyncadd (%p5037_p8), [#allocation12], 4294967232 }
  0xf3   : > { %4079 = dma.done.wait (%p5038_p11), [#allocation15], 32   ;;  %p5039_p13 = pmov %p5030_p0 }
  0xf4   : > { %p678_p1 = scmp.lt.s32.totalorder %s4244_s28, 1  ;;  %v4114_v0 = vmov 0   ;;  %v4115_v1 = vmov 0.0|0.0   ;;  %v4116_v2 = vmov 0.0   ;;  %s5040_s0 = sld [smem:[#allocation31_spill]]  ;;  %v700_v4 = vld [vmem:[#allocation2] sm:$0xff]  ;;  %v692_v7 = vlaneseq }
  0xf5   : > { %4081 = vsyncadd (%p5039_p13), [#allocation15], 4294967264  ;;  %3753 = vset.pattern.permute.xlu0 %v4114_v0  ;;  %3548 = vmatprep.subr.bf16.mxu0 %v4115_v1  ;;  %v701_v5 = vld [vmem:[#allocation2 + $0x8] sm:$0xff]  ;;  %vm4117_vm0 = vmmov 0   ;;  %v778_v9 = vld [vmem:[%s4963_s4] sm:$0xff]  ;;  %vm703_vm1 = vcmask 130048  }
  0xf6   : > { %s4511_s16 = scalar_select %p678_p1, %s4244_s28, 1  ;;  %3380 = vmatprep.subr.mxu1 %v4116_v2  ;;  %v3549_v6 = vpack.c.bf16 %v701_v5, %v700_v4  ;;  %3361 = vmatprep.mubr.msk.f32.mxu0 %vm4117_vm0, %v4116_v2  ;;  %v693_v8 = vand.u32 127, %v692_v7  ;;  %v779_v10 = vld [vmem:[%s4963_s4 + $0x8] sm:$0xff]  ;;  %v780_v14 = vld [vmem:[%s4963_s4 + $0x10] sm:$0xff]  ;;  %v781_v15 = vld [vmem:[%s4963_s4 + $0x18] sm:$0xff]  ;;  %vm789_vm3 = vcmask 261120  }
  0xf7   : > { %3382 = vmatprep.mubr.msk.f32.mxu1 %vm4117_vm0, %v4116_v2  ;;  %v3552_v12 = vpack.c.bf16 %v779_v10, %v778_v9  ;;  %v3555_v16 = vpack.c.bf16 %v781_v15, %v780_v14  ;;  %v702_v17 = vld [vmem:[%s4961_s2] sm:$0xff]  ;;  %s4118_s27 = smov 96   ;;  %s5005_s30 = smov 80   ;;  %vm866_vm4 = vcmask 64512   ;;  %vm1550_vm6 = vcmask 195584  }
  0xf8   : > { %s3190_s21 = sshll.u32 %s4511_s16, 3  ;;  %3550 = vmatpush3.bf16.msra.mxu0 %v3549_v6  ;;  %v3196_v21 = vld [vmem:[%s4964_s5] ss:$0 sm:$0xff]  ;;  %s4122_s23 = smov 112   ;;  %vm1767_vm7 = vcmask 523264  }
  0xf9   : > { %3551 = vmatprep.subr.bf16.mxu0 %v4115_v1  ;;  %s5004_s26 = smov 72   ;;  %s685_s20 = scalar_lea.vmem %s4962_s3, %s3190_s21 }
  0xfa   : > { %s681_s24 = scalar_lea.vmem %s5040_s0, %s3190_s21  ;;  %s4999_s0 = smov 64   ;;  %v4581_v27 = vld [vmem:[%s685_s20] sm:$0xff] }
  0xfb   : > { %v691_v3 = vld [vmem:[%s681_s24] sm:$0xff]  ;;  %s4120_s24 = smov 120   ;;  %vm942_vm5 = vcmp.gt.f32.partialorder %v4581_v27, 0.0  ;;  %s4124_s21 = smov 88  }
  0xfc   : > { %695 = vperm.xlu0 %3753, %v691_v3   ;;  %s4125_s18 = smov 104   ;;  %s3273_s19 = sshll.u32 %s4511_s16, 6 }
  0xfd   : > { %s4596_s12 = scalar_lea.vmem %s4976_s17, %s3273_s19  ;;  %s5003_s16 = smov 56  }
  0xfe   : > { %s4997_s29 = smov 40   ;;  %s4998_s7 = smov 48  }
  0xff   : > { %s5002_s25 = smov 8   ;;  %s5001_s20 = smov 16  }
 0x100   : > { %s5041_s19 = sld [smem:[#allocation34_spill]]  ;;  %s5042_s1 = sld [smem:[#allocation35_spill]] }
 0x101   : > { %s5052_s10 = sld [smem:[#allocation24_spill]] }
 0x17b   : > { %v696_v11 = vpop.permute.xlu0 %695 }
 0x17c   : > { %vm697_vm2 = vcmp.eq.s32.totalorder %v696_v11, %v693_v8 }
 0x17d   : > { %v3194_v13 = vsel %vm697_vm2, 1.0, %v4116_v2 }
 0x17e   : > { %3362 = vmatmul.mubr.msk.f32.vlgmr.msra.gmra.mrb[0].mxu0 %vm703_vm1, %v3194_v13 }
 0x17f   : > { %3553 = vmatpush3.bf16.msra.mxu0 %v3552_v12  ;;  %3372 = vmatprep.mubr.msk.f32.mxu0 %vm4117_vm0, %v4116_v2 }
 0x180   : > { %3554 = vmatprep.subr.bf16.mxu0 %v4115_v1 }
 0x183   : > { %3556 = vmatpush3.bf16.msra.mxu0 %v3555_v16 }
 0x184   : > { %3375 = vmatprep.subr.mxu0 %v4116_v2 }
 0x251   : > { %v773_v18 = vpop.f32.mrb[0].mxu0 }
 0x252   : > { %v4546_v19 = vadd.f32 %v773_v18, %v702_v17  ;;  %v3363_v20 = vpop.f32.mrb[1].mxu0 }
 0x254   : > { %3373 = vmatmul.mubr.msk.f32.vlgmr.msra.gmra.mrb[2].mxu0 %vm789_vm3, %v4546_v19 }
 0x255   : > { %3377 = vmatprep.mubr.msk.f32.mxu0 %vm4117_vm0, %v4116_v2 }
 0x327   : > { %v859_v22 = vpop.f32.mrb[2].mxu0 }
 0x328   : > { %v4555_v23 = vadd.f32 %v3196_v21, %v859_v22  ;;  %v3374_v24 = vpop.f32.mrb[3].mxu0 }
 0x32a   : > { %864 = vrot.lane.b32.xlu0 %v4555_v23, %s4118_s27 }
 0x32e   : > { %955 = vrot.lane.b32.xlu0 %v4555_v23, %s4999_s0  ;;  %s5044_s0 = smov 72  }
 0x332   : > { %1031 = vrot.lane.b32.xlu0 %v4555_v23, %s4120_s24 }
 0x336   : > { %1200 = vrot.lane.b32.xlu0 %v4555_v23, %s5005_s30  ;;  %s5049_s30 = smov 8  }
 0x33a   : > { %1198 = vrot.lane.b32.xlu0 %v4555_v23, %s4122_s23 }
 0x33e   : > { %1367 = vrot.lane.b32.xlu0 %v4555_v23, %s5004_s26 }
 0x39c   : > { %v865_v25 = vpop.permute.xlu0 %864 }
 0x39d   : > { %3376 = vmatpush3.xpose.msk.msra.mxu0 %vm866_vm4, %v865_v25 }
 0x39e   : > { %3390 = vmatprep.subr.mxu0 %v4116_v2 }
 0x3a0   : > { %3378 = vmatmul.mubr.msk.f32.vlgmr.msra.gmra.mrb[4].mxu0 %vm866_vm4, %v4555_v23  ;;  %v956_v26 = vpop.permute.xlu0 %955 }
 0x3a1   : > { %3381 = vmatpush3.msra.mxu1 %v956_v26  ;;  %3392 = vmatprep.mubr.msk.f32.mxu0 %vm4117_vm0, %v4116_v2 }
 0x3a2   : > { %3385 = vmatprep.subr.mxu1 %v4116_v2 }
 0x3a4   : > { %v1032_v39 = vpop.permute.xlu0 %1031 }
 0x3a8   : > { %v1201_v40 = vpop.permute.xlu0 %1200 }
 0x3ac   : > { %v1199_v44 = vpop.permute.xlu0 %1198 }
 0x3b0   : > { %v1368_v45 = vpop.permute.xlu0 %1367 }
 0x473   : > { %v937_v28 = vpop.f32.mrb[4].mxu0 }
 0x474   : > { %v941_v29 = vmul.f32 0.35355338, %v937_v28  ;;  %v3379_v30 = vpop.f32.mrb[5].mxu0 }
 0x476   : > { %v943_v31 = vsel %vm942_vm5, %v941_v29, -1e+09 }
 0x477   : > { %v944_v32 = vsel %vm866_vm4, %v943_v31, -inf }
 0x478   : > { %945 = vmax.xlane.f32.xlu1 %v944_v32  ;;  %v1553_v32 = vld [vmem:[%s4965_s6 + $0x8] sm:$0xff] }
 0x505   : > { %v946_v33 = vpop.xlane.xlu1 %945 }
 0x506   : > { %v947_v34 = vsub.f32 %v943_v31, %v946_v33  ;;  %v1552_v31 = vld [vmem:[%s4965_s6] sm:$0xff] }
 0x507   : > { %v3558_v33 = vpack.c.bf16 %v1553_v32, %v1552_v31  ;;  %v3216_v31 = vld [vmem:[#allocation11] ss:$0 sm:$0xff] }
 0x508   : > { %v948_v35 = vmul.f32 1.442695, %v947_v34  ;;  %v1554_v34 = vld [vmem:[%s4965_s6 + $0x10] sm:$0xff] }
 0x50a   : > { %3754 = vpow2.f32 %v948_v35  ;;  %v1555_v35 = vld [vmem:[%s4965_s6 + $0x18] sm:$0xff] }
 0x514   : > { %v3755_v36 = vpop.eup %3754 }
 0x515   : > { %v950_v37 = vsel %vm866_vm4, %v3755_v36, 0.0 }
 0x516   : > { %951 = vadd.xlane.f32.xlu1 %v950_v37 }
 0x527   : > { %1033 = vrot.lane.b32.xlu1 %v4555_v23, %s4124_s21 }
 0x52b   : > { %1365 = vrot.lane.b32.xlu1 %v4555_v23, %s4125_s18 }
 0x5a3   : > { %v952_v38 = vpop.xlane.xlu1 %951 }
 0x5a4   : > { %3756 = vrcp.f32 %v952_v38 }
 0x5a7   : > { %v1034_v43 = vpop.permute.xlu1 %1033 }
 0x5ab   : > { %v1366_v46 = vpop.permute.xlu1 %1365 }
 0x5ae   : > { %v3757_v41 = vpop.eup %3756 }
 0x5af   : > { %v954_v42 = vmul.f32 %v3757_v41, %v3755_v36  ;;  %v3561_v36 = vpack.c.bf16 %v1555_v35, %v1554_v34 }
 0x5b1   : > { %3383 = vmatmul.mubr.msk.f32.vlgmr.msra.gmra.mrb[0].mxu1 %vm866_vm4, %v954_v42  ;;  %1532 = vst.msk [vmem:[%s4596_s12] sm:$0xff] %vm866_vm4, %v954_v42 }
 0x5b2   : > { %3386 = vmatpush3.xpose.msk.msra.mxu1 %vm866_vm4, %v1034_v43  ;;  %3387 = vmatprep.mubr.msk.f32.mxu1 %vm4117_vm0, %v4116_v2 }
 0x5b3   : > { %3395 = vmatprep.subr.mxu1 %v4116_v2 }
 0x5b5   : > { %3388 = vmatmul.mubr.msk.f32.vlgmr.msra.gmra.mrb[2].mxu1 %vm866_vm4, %v1032_v39 }
 0x5b6   : > { %3396 = vmatpush3.xpose.msk.msra.mxu1 %vm866_vm4, %v1201_v40  ;;  %3397 = vmatprep.mubr.msk.f32.mxu1 %vm4117_vm0, %v4116_v2 }
 0x5b7   : > { %3405 = vmatprep.subr.mxu1 %v4116_v2 }
 0x5b9   : > { %3398 = vmatmul.mubr.msk.f32.vlgmr.msra.gmra.mrb[4].mxu1 %vm866_vm4, %v1199_v44 }
 0x5ba   : > { %3406 = vmatpush3.xpose.msk.msra.mxu1 %vm866_vm4, %v1368_v45  ;;  %3407 = vmatprep.mubr.msk.f32.mxu1 %vm4117_vm0, %v4116_v2 }
 0x5bb   : > { %3557 = vmatprep.subr.bf16.mxu1 %v4115_v1 }
 0x5bd   : > { %3408 = vmatmul.mubr.msk.f32.vlgmr.msra.gmra.mrb[6].mxu1 %vm866_vm4, %v1366_v46 }
 0x5be   : > { %3423 = vmatprep.mubr.msk.f32.mxu1 %vm4117_vm0, %v4116_v2  ;;  %3559 = vmatpush3.bf16.msra.mxu1 %v3558_v33 }
 0x5bf   : > { %3560 = vmatprep.subr.bf16.mxu1 %v4115_v1 }
 0x5c2   : > { %3562 = vmatpush3.bf16.msra.mxu1 %v3561_v36 }
 0x5c3   : > { %3569 = vmatprep.subr.bf16.mxu1 %v4115_v1 }
 0x684   : > { %v4618_v47 = vpop.f32.mrb[0].mxu1 }
 0x685   : > { %v3384_v48 = vpop.f32.mrb[1].mxu1 }
 0x688   : > { %v1105_v49 = vpop.f32.mrb[2].mxu1 }
 0x689   : > { %v1109_v50 = vmul.f32 0.35355338, %v1105_v49  ;;  %v3389_v51 = vpop.f32.mrb[3].mxu1 }
 0x68b   : > { %v1110_v52 = vsel %vm942_vm5, %v1109_v50, -1e+09  ;;  %v3210_v50 = vld [vmem:[#allocation5] ss:$0 sm:$0xff] }
 0x68c   : > { %v1272_v53 = vpop.f32.mrb[4].mxu1  ;;  %v1111_v54 = vsel %vm866_vm4, %v1110_v52, -inf }
 0x68d   : > { %v1276_v55 = vmul.f32 0.35355338, %v1272_v53  ;;  %1112 = vmax.xlane.f32.xlu0 %v1111_v54  ;;  %v3399_v56 = vpop.f32.mrb[5].mxu1 }
 0x68f   : > { %v1277_v57 = vsel %vm942_vm5, %v1276_v55, -1e+09 }
 0x690   : > { %v1439_v58 = vpop.f32.mrb[6].mxu1  ;;  %v1278_v59 = vsel %vm866_vm4, %v1277_v57, -inf }
 0x691   : > { %v1443_v60 = vmul.f32 0.35355338, %v1439_v58  ;;  %1279 = vmax.xlane.f32.xlu1 %v1278_v59  ;;  %v3409_v61 = vpop.f32.mrb[7].mxu1 }
 0x692   : > { %v1668_v61 = vld [vmem:[%s5041_s19 + $0x8] sm:$0xff] }
 0x693   : > { %v1444_v62 = vsel %vm942_vm5, %v1443_v60, -1e+09  ;;  %v1667_v60 = vld [vmem:[%s5041_s19] sm:$0xff] }
 0x694   : > { %v1445_v63 = vsel %vm866_vm4, %v1444_v62, -inf }
 0x695   : > { %1446 = vmax.xlane.f32.xlu0 %v1445_v63  ;;  %v1670_v63 = vld [vmem:[%s5041_s19 + $0x18] sm:$0xff] }
 0x6a2   : > { %1122 = vrot.lane.b32.xlu1 %v4555_v23, %s5003_s16  ;;  %s5053_s16 = sld [smem:[#allocation29_spill]] }
 0x6a8   : > { %p5055_p9 = scmp.ne.s32.totalorder %s5053_s16, 0 }
 0x71a   : > { %v1113_v0 = vpop.xlane.xlu0 %1112 }
 0x71b   : > { %v1114_v3 = vsub.f32 %v1110_v52, %v1113_v0 }
 0x71d   : > { %v1115_v4 = vmul.f32 1.442695, %v1114_v3  ;;  %v1752_v3 = vld [vmem:[%s5042_s1] sm:$0xff] }
 0x71e   : > { %v1280_v5 = vpop.xlane.xlu1 %1279 }
 0x71f   : > { %3758 = vpow2.f32 %v1115_v4  ;;  %v1281_v6 = vsub.f32 %v1277_v57, %v1280_v5  ;;  %v1753_v4 = vld [vmem:[%s5042_s1 + $0x8] sm:$0xff]  ;;  %v1754_v5 = vld [vmem:[%s5042_s1 + $0x10] sm:$0xff] }
 0x721   : > { %v1282_v7 = vmul.f32 1.442695, %v1281_v6  ;;  %v3570_v6 = vpack.c.bf16 %v1753_v4, %v1752_v3 }
 0x722   : > { %v1447_v8 = vpop.xlane.xlu0 %1446  ;;  %v1123_v9 = vpop.permute.xlu1 %1122 }
 0x723   : > { %3760 = vpow2.f32 %v1282_v7  ;;  %v1448_v10 = vsub.f32 %v1444_v62, %v1447_v8  ;;  %3391 = vmatpush3.msra.mxu0 %v1123_v9  ;;  %v3564_v62 = vpack.c.bf16 %v1668_v61, %v1667_v60  ;;  %v1755_v7 = vld [vmem:[%s5042_s1 + $0x18] sm:$0xff]  ;;  %v1756_v9 = vld [vmem:[%s5042_s1 + $0x20] sm:$0xff] }
 0x724   : > { %3400 = vmatprep.subr.mxu0 %v4116_v2  ;;  %v3573_v8 = vpack.c.bf16 %v1755_v7, %v1754_v5 }
 0x725   : > { %v1449_v11 = vmul.f32 1.442695, %v1448_v10  ;;  %v1757_v10 = vld [vmem:[%s5042_s1 + $0x28] sm:$0xff] }
 0x727   : > { %3762 = vpow2.f32 %v1449_v11  ;;  %v3576_v11 = vpack.c.bf16 %v1757_v10, %v1756_v9 }
 0x729   : > { %v3759_v12 = vpop.eup %3758 }
 0x72a   : > { %v1117_v13 = vsel %vm866_vm4, %v3759_v12, 0.0 }
 0x72b   : > { %1118 = vadd.xlane.f32.xlu0 %v1117_v13 }
 0x72d   : > { %v3761_v14 = vpop.eup %3760 }
 0x72e   : > { %v1284_v15 = vsel %vm866_vm4, %v3761_v14, 0.0 }
 0x72f   : > { %1285 = vadd.xlane.f32.xlu1 %v1284_v15 }
 0x731   : > { %v3763_v16 = vpop.eup %3762 }
 0x732   : > { %v1451_v17 = vsel %vm866_vm4, %v3763_v16, 0.0 }
 0x733   : > { %1452 = vadd.xlane.f32.xlu0 %v1451_v17 }
 0x740   : > { %1456 = vrot.lane.b32.xlu1 %v4555_v23, %s4997_s29  ;;  %s5000_s29 = smov 24  }
 0x749   : > { %1289 = vrot.lane.b32.xlu0 %v4555_v23, %s4998_s7 }
 0x7b8   : > { %v1119_v18 = vpop.xlane.xlu0 %1118 }
 0x7b9   : > { %3764 = vrcp.f32 %v1119_v18  ;;  %v3213_v18 = vld [vmem:[#allocation8] ss:$0 sm:$0xff] }
 0x7bc   : > { %v1286_v20 = vpop.xlane.xlu1 %1285 }
 0x7bd   : > { %3766 = vrcp.f32 %v1286_v20 }
 0x7c0   : > { %v1453_v21 = vpop.xlane.xlu0 %1452  ;;  %v1457_v28 = vpop.permute.xlu1 %1456 }
 0x7c1   : > { %3768 = vrcp.f32 %v1453_v21 }
 0x7c3   : > { %v3765_v22 = vpop.eup %3764 }
 0x7c4   : > { %v1121_v24 = vmul.f32 %v3765_v22, %v3759_v12  ;;  %v1290_v25 = vpop.permute.xlu0 %1289  ;;  %v1758_v22 = vld [vmem:[%s5042_s1 + $0x30] sm:$0xff] }
 0x7c6   : > { %1533 = vst.msk [vmem:[%s4596_s12 + $0x8] sm:$0xff] %vm866_vm4, %v1121_v24  ;;  %3393 = vmatmul.mubr.msk.f32.vlgmr.msra.gmra.mrb[6].mxu0 %vm866_vm4, %v1121_v24  ;;  %v1759_v24 = vld [vmem:[%s5042_s1 + $0x38] sm:$0xff] }
 0x7c7   : > { %v3767_v26 = vpop.eup %3766  ;;  %3401 = vmatpush3.msra.mxu0 %v1290_v25  ;;  %3402 = vmatprep.mubr.msk.f32.mxu0 %vm4117_vm0, %v4116_v2  ;;  %v3579_v25 = vpack.c.bf16 %v1759_v24, %v1758_v22 }
 0x7c8   : > { %v1288_v23 = vmul.f32 %v3767_v26, %v3761_v14  ;;  %3410 = vmatprep.subr.mxu0 %v4116_v2  ;;  %v3214_v26 = vld [vmem:[#allocation10] ss:$0 sm:$0xff] }
 0x7ca   : > { %1534 = vst.msk [vmem:[%s4596_s12 + $0x10] sm:$0xff] %vm866_vm4, %v1288_v23  ;;  %3403 = vmatmul.mubr.msk.f32.vlgmr.msra.gmra.mrb[8].mxu0 %vm866_vm4, %v1288_v23 }
 0x7cb   : > { %v3769_v29 = vpop.eup %3768  ;;  %3411 = vmatpush3.msra.mxu0 %v1457_v28  ;;  %3412 = vmatprep.mubr.msk.f32.mxu0 %vm4117_vm0, %v4116_v2 }
 0x7cc   : > { %v1455_v30 = vmul.f32 %v3769_v29, %v3763_v16  ;;  %3563 = vmatprep.subr.bf16.mxu0 %v4115_v1  ;;  %v3212_v16 = vld [vmem:[#allocation7] ss:$0 sm:$0xff] }
 0x7ce   : > { %1535 = vst.msk [vmem:[%s4596_s12 + $0x18] sm:$0xff] %vm866_vm4, %v1455_v30  ;;  %3413 = vmatmul.mubr.msk.f32.vlgmr.msra.gmra.mrb[10].mxu0 %vm866_vm4, %v1455_v30 }
 0x7cf   : > { %3434 = vmatprep.mubr.msk.f32.mxu0 %vm4117_vm0, %v4116_v2  ;;  %3565 = vmatpush3.bf16.msra.mxu0 %v3564_v62 }
 0x7d0   : > { %3566 = vmatprep.subr.bf16.mxu0 %v4115_v1 }
 0x899   : > { %v1194_v37 = vpop.f32.mrb[6].mxu0 }
 0x89a   : > { %1537 = vrot.lane.b32.xlu1 %v1194_v37, %s5002_s25  ;;  %v3394_v38 = vpop.f32.mrb[7].mxu0  ;;  %s5043_s25 = smov 80  }
 0x89d   : > { %v1361_v39 = vpop.f32.mrb[8].mxu0 }
 0x89e   : > { %1541 = vrot.lane.b32.xlu0 %v1361_v39, %s5001_s20  ;;  %v3404_v40 = vpop.f32.mrb[9].mxu0  ;;  %s668_s20 = sand.u32 1, %s5052_s10  }
 0x89f   : > { %s2973_s7 = scalar_lea.sflag [#allocation4], %s668_s20 }
 0x8a1   : > { %v1528_v41 = vpop.f32.mrb[10].mxu0 }
 0x8a2   : > { %1545 = vrot.lane.b32.xlu1 %v1528_v41, %s5000_s29  ;;  %v3414_v42 = vpop.f32.mrb[11].mxu0  ;;  %s3189_s29 = sshll.u32 %s668_s20, 3 }
 0x8a3   : > { %v3220_v42 = vld [vmem:[%s4963_s4 + $0x20] sm:$0xff] }
 0x90c   : > { %v1538_v43 = vpop.permute.xlu1 %1537 }
 0x90d   : > { %v1548_v45 = vsel %vm866_vm4, %v4618_v47, %v1538_v43  ;;  %v3221_v43 = vld [vmem:[%s4963_s4 + $0x28] sm:$0xff] }
 0x910   : > { %v1542_v44 = vpop.permute.xlu0 %1541 }
 0x911   : > { %v1549_v46 = vsel %vm703_vm1, %v1548_v45, %v1542_v44  ;;  %v3582_v44 = vpack.c.bf16 %v3221_v43, %v3220_v42  ;;  %v3222_v45 = vld [vmem:[%s4963_s4 + $0x30] sm:$0xff] }
 0x914   : > { %v1546_v48 = vpop.permute.xlu1 %1545 }
 0x915   : > { %v1551_v49 = vsel %vm1550_vm6, %v1549_v46, %v1546_v48  ;;  %v3223_v46 = vld [vmem:[%s4963_s4 + $0x38] sm:$0xff] }
 0x916   : > { %3424 = vmatmul.mubr.msk.f32.vlgmr.msra.gmra.mrb[8].mxu1 %vm789_vm3, %v1551_v49  ;;  %v3585_v48 = vpack.c.bf16 %v3223_v46, %v3222_v45 }
 0x917   : > { %3453 = vmatprep.mubr.msk.f32.mxu1 %vm4117_vm0, %v4116_v2  ;;  %3571 = vmatpush3.bf16.msra.mxu1 %v3570_v6 }
 0x918   : > { %3572 = vmatprep.subr.bf16.mxu1 %v4115_v1 }
 0x91b   : > { %3574 = vmatpush3.bf16.msra.mxu1 %v3573_v8 }
 0x91c   : > { %3575 = vmatprep.subr.bf16.mxu1 %v4115_v1 }
 0x91f   : > { %3577 = vmatpush3.bf16.msra.mxu1 %v3576_v11 }
 0x920   : > { %3578 = vmatprep.subr.bf16.mxu1 %v4115_v1 }
 0x923   : > { %3580 = vmatpush3.bf16.msra.mxu1 %v3579_v25 }
 0x924   : > { %3477 = vmatprep.subr.mxu1 %v4116_v2 }
 0x9e9   : > { %v1632_v51 = vpop.f32.mrb[8].mxu1 }
 0x9ea   : > { %v1633_v52 = vadd.f32 %v3210_v50, %v1632_v51  ;;  %v3425_v53 = vpop.f32.mrb[9].mxu1 }
 0x9eb   : > { %v3218_v53 = vld [vmem:[#allocation13] ss:$0 sm:$0xff] }
 0x9ec   : > { %v1636_v54 = vadd.f32 %v1633_v52, %v4546_v19  ;;  %v1669_v19 = vld [vmem:[%s5041_s19 + $0x10] sm:$0xff] }
 0x9ed   : > { %v3567_v0 = vpack.c.bf16 %v1670_v63, %v1669_v19 }
 0x9ee   : > { %v1639_v55 = vsel %vm789_vm3, %v1636_v54, 0.0 }
 0x9ef   : > { %1640 = vadd.xlane.f32.xlu0 %v1639_v55  ;;  %3568 = vmatpush3.bf16.msra.mxu0 %v3567_v0  ;;  %v3219_v55 = vld [vmem:[#allocation14] ss:$0 sm:$0xff] }
 0x9f0   : > { %3581 = vmatprep.subr.bf16.mxu0 %v4115_v1 }
 0xa7c   : > { %v1641_v47 = vpop.xlane.xlu0 %1640 }
 0xa7d   : > { %v1643_v56 = vmul.f32 0.03125, %v1641_v47 }
 0xa7f   : > { %v1644_v57 = vsub.f32 %v1636_v54, %v1643_v56 }
 0xa81   : > { %v1645_v58 = vmul.f32 %v1644_v57, %v1644_v57 }
 0xa83   : > { %v1646_v59 = vsel %vm789_vm3, %v1645_v58, 0.0 }
 0xa84   : > { %1647 = vadd.xlane.f32.xlu1 %v1646_v59 }
 0xb11   : > { %v1648_v12 = vpop.xlane.xlu1 %1647 }
 0xb12   : > { %v1649_v13 = vmul.f32 0.03125, %v1648_v12 }
 0xb14   : > { %v1650_v14 = vadd.f32 1e-06, %v1649_v13 }
 0xb16   : > { %3770 = vrsqrt.f32 %v1650_v14 }
 0xb20   : > { %v3771_v15 = vpop.eup %3770 }
 0xb21   : > { %v1652_v17 = vmul.f32 %v3771_v15, %v1644_v57  ;;  %v3225_v57 = vld [vmem:[%s4964_s5 + $0x1] ss:$0 sm:$0xff] }
 0xb23   : > { %v1659_v20 = vmul.f32 %v3212_v16, %v1652_v17 }
 0xb25   : > { %v1666_v21 = vadd.f32 %v3213_v18, %v1659_v20 }
 0xb27   : > { %3435 = vmatmul.mubr.msk.f32.vlgmr.msra.gmra.mrb[12].mxu0 %vm789_vm3, %v1666_v21 }
 0xb28   : > { %3464 = vmatprep.mubr.msk.f32.mxu0 %vm4117_vm0, %v4116_v2  ;;  %3583 = vmatpush3.bf16.msra.mxu0 %v3582_v44 }
 0xb29   : > { %3584 = vmatprep.subr.bf16.mxu0 %v4115_v1 }
 0xb2c   : > { %3586 = vmatpush3.bf16.msra.mxu0 %v3585_v48 }
 0xb2d   : > { %3467 = vmatprep.subr.mxu0 %v4116_v2 }
 0xbfa   : > { %v1747_v23 = vpop.f32.mrb[12].mxu0 }
 0xbfb   : > { %v1748_v28 = vadd.f32 %v3214_v26, %v1747_v23  ;;  %v3436_v29 = vpop.f32.mrb[13].mxu0 }
 0xbfd   : > { %v1751_v30 = vmax.f32 %v1748_v28, 0.0 }
 0xbff   : > { %3454 = vmatmul.mubr.msk.f32.vlgmr.msra.gmra.mrb[10].mxu1 %vm1767_vm7, %v1751_v30 }
 0xc00   : > { %3479 = vmatprep.mubr.msk.f32.mxu1 %vm4117_vm0, %v4116_v2 }
 0xcd2   : > { %v1837_v32 = vpop.f32.mrb[10].mxu1 }
 0xcd3   : > { %v1838_v33 = vadd.f32 %v3216_v31, %v1837_v32  ;;  %v3455_v34 = vpop.f32.mrb[11].mxu1 }
 0xcd5   : > { %v1841_v35 = vadd.f32 %v1838_v33, %v1666_v21 }
 0xcd7   : > { %v1844_v36 = vsel %vm789_vm3, %v1841_v35, 0.0 }
 0xcd8   : > { %1845 = vadd.xlane.f32.xlu0 %v1844_v36 }
 0xd65   : > { %v1846_v37 = vpop.xlane.xlu0 %1845 }
 0xd66   : > { %v1847_v38 = vmul.f32 0.03125, %v1846_v37 }
 0xd68   : > { %v1848_v39 = vsub.f32 %v1841_v35, %v1847_v38 }
 0xd6a   : > { %v1849_v40 = vmul.f32 %v1848_v39, %v1848_v39 }
 0xd6c   : > { %v1850_v41 = vsel %vm789_vm3, %v1849_v40, 0.0 }
 0xd6d   : > { %1851 = vadd.xlane.f32.xlu0 %v1850_v41 }
 0xdfa   : > { %v1852_v49 = vpop.xlane.xlu0 %1851 }
 0xdfb   : > { %v1853_v50 = vmul.f32 0.03125, %v1852_v49 }
 0xdfd   : > { %v1854_v51 = vadd.f32 1e-06, %v1853_v50 }
 0xdff   : > { %3772 = vrsqrt.f32 %v1854_v51 }
 0xe09   : > { %v3773_v52 = vpop.eup %3772 }
 0xe0a   : > { %v1856_v54 = vmul.f32 %v3773_v52, %v1848_v39 }
 0xe0c   : > { %v1863_v47 = vmul.f32 %v3218_v53, %v1856_v54 }
 0xe0e   : > { %v4747_v56 = vadd.f32 %v3219_v55, %v1863_v47 }
 0xe10   : > { %3465 = vmatmul.mubr.msk.f32.vlgmr.msra.gmra.mrb[14].mxu0 %vm789_vm3, %v4747_v56 }
 0xe11   : > { %3469 = vmatprep.mubr.msk.f32.mxu0 %vm4117_vm0, %v4116_v2 }
 0xee3   : > { %v1953_v58 = vpop.f32.mrb[14].mxu0 }
 0xee4   : > { %v4756_v59 = vadd.f32 %v3225_v57, %v1953_v58  ;;  %v3466_v60 = vpop.f32.mrb[15].mxu0 }
 0xee6   : > { %2125 = vrot.lane.b32.xlu0 %v4756_v59, %s4124_s21  ;;  %1958 = vrot.lane.b32.xlu1 %v4756_v59, %s4118_s27  ;;  %s5045_s27 = smov 56   ;;  %s5048_s21 = smov 40  }
 0xeea   : > { %2290 = vrot.lane.b32.xlu0 %v4756_v59, %s4122_s23  ;;  %2123 = vrot.lane.b32.xlu1 %v4756_v59, %s4120_s24  ;;  %s5046_s24 = smov 64   ;;  %s5047_s23 = smov 48  }
 0xeee   : > { %2457 = vrot.lane.b32.xlu0 %v4756_v59, %s4125_s18  ;;  %2292 = vrot.lane.b32.xlu1 %v4756_v59, %s5043_s25  ;;  %s5050_s25 = smov 16  }
 0xef2   : > { %2459 = vrot.lane.b32.xlu1 %v4756_v59, %s5044_s0  ;;  %s5051_s0 = smov 24  }
 0xf58   : > { %v2126_v61 = vpop.permute.xlu0 %2125  ;;  %v1959_v62 = vpop.permute.xlu1 %1958 }
 0xf59   : > { %3468 = vmatpush3.xpose.msk.msra.mxu0 %vm866_vm4, %v1959_v62  ;;  %3478 = vmatpush3.xpose.msk.msra.mxu1 %vm866_vm4, %v2126_v61 }
 0xf5a   : > { %3487 = vmatprep.subr.mxu1 %v4116_v2  ;;  %3472 = vmatprep.subr.mxu0 %v4116_v2 }
 0xf5c   : > { %3470 = vmatmul.mubr.msk.f32.vlgmr.msra.gmra.mrb[16].mxu0 %vm866_vm4, %v4756_v59  ;;  %v2124_v19 = vpop.permute.xlu1 %2123  ;;  %v2291_v0 = vpop.permute.xlu0 %2290 }
 0xf5d   : > { %3480 = vmatmul.mubr.msk.f32.vlgmr.msra.gmra.mrb[12].mxu1 %vm866_vm4, %v2124_v19  ;;  %3474 = vmatprep.mubr.msk.f32.mxu0 %vm4117_vm0, %v4116_v2  ;;  %v3243_v19 = vld [vmem:[%s4965_s6 + $0x20] sm:$0xff] }
 0xf5e   : > { %3489 = vmatprep.mubr.msk.f32.mxu1 %vm4117_vm0, %v4116_v2 }
 0xf60   : > { %v2293_v63 = vpop.permute.xlu1 %2292  ;;  %v2458_v4 = vpop.permute.xlu0 %2457 }
 0xf61   : > { %3488 = vmatpush3.xpose.msk.msra.mxu1 %vm866_vm4, %v2293_v63  ;;  %v3244_v63 = vld [vmem:[%s4965_s6 + $0x28] sm:$0xff] }
 0xf62   : > { %3497 = vmatprep.subr.mxu1 %v4116_v2 }
 0xf64   : > { %3490 = vmatmul.mubr.msk.f32.vlgmr.msra.gmra.mrb[14].mxu1 %vm866_vm4, %v2291_v0  ;;  %v2460_v3 = vpop.permute.xlu1 %2459  ;;  %v3588_v0 = vpack.c.bf16 %v3244_v63, %v3243_v19 }
 0xf65   : > { %3498 = vmatpush3.xpose.msk.msra.mxu1 %vm866_vm4, %v2460_v3  ;;  %3499 = vmatprep.mubr.msk.f32.mxu1 %vm4117_vm0, %v4116_v2 }
 0xf66   : > { %3587 = vmatprep.subr.bf16.mxu1 %v4115_v1 }
 0xf68   : > { %3500 = vmatmul.mubr.msk.f32.vlgmr.msra.gmra.mrb[16].mxu1 %vm866_vm4, %v2458_v4 }
 0xf69   : > { %3515 = vmatprep.mubr.msk.f32.mxu1 %vm4117_vm0, %v4116_v2  ;;  %3589 = vmatpush3.bf16.msra.mxu1 %v3588_v0 }
 0xf6a   : > { %3590 = vmatprep.subr.bf16.mxu1 %v4115_v1 }
0x102f   : > { %v2030_v5 = vpop.f32.mrb[16].mxu0 }
0x1030   : > { %v2034_v6 = vmul.f32 0.35355338, %v2030_v5  ;;  %v3471_v7 = vpop.f32.mrb[17].mxu0  ;;  %v2197_v8 = vpop.f32.mrb[12].mxu1 }
0x1031   : > { %v2201_v9 = vmul.f32 0.35355338, %v2197_v8  ;;  %v3481_v10 = vpop.f32.mrb[13].mxu1  ;;  %v3245_v7 = vld [vmem:[%s4965_s6 + $0x30] sm:$0xff]  ;;  %v3246_v8 = vld [vmem:[%s4965_s6 + $0x38] sm:$0xff] }
0x1032   : > { %v2035_v11 = vsel %vm942_vm5, %v2034_v6, -1e+09 }
0x1033   : > { %v2036_v12 = vsel %vm866_vm4, %v2035_v11, -inf  ;;  %v2202_v13 = vsel %vm942_vm5, %v2201_v9, -1e+09  ;;  %v3591_v9 = vpack.c.bf16 %v3246_v8, %v3245_v7 }
0x1034   : > { %2037 = vmax.xlane.f32.xlu1 %v2036_v12  ;;  %v2203_v14 = vsel %vm866_vm4, %v2202_v13, -inf }
0x1035   : > { %2204 = vmax.xlane.f32.xlu0 %v2203_v14  ;;  %3592 = vmatpush3.bf16.msra.mxu1 %v3591_v9 }
0x1036   : > { %3599 = vmatprep.subr.bf16.mxu1 %v4115_v1 }
0x1037   : > { %v2364_v15 = vpop.f32.mrb[14].mxu1 }
0x1038   : > { %v2368_v16 = vmul.f32 0.35355338, %v2364_v15  ;;  %v3491_v17 = vpop.f32.mrb[15].mxu1 }
0x103a   : > { %v2369_v18 = vsel %vm942_vm5, %v2368_v16, -1e+09 }
0x103b   : > { %v2531_v20 = vpop.f32.mrb[16].mxu1  ;;  %v2370_v21 = vsel %vm866_vm4, %v2369_v18, -inf }
0x103c   : > { %v2535_v22 = vmul.f32 0.35355338, %v2531_v20  ;;  %2371 = vmax.xlane.f32.xlu0 %v2370_v21  ;;  %v3501_v24 = vpop.f32.mrb[17].mxu1  ;;  %v3247_v21 = vld [vmem:[#allocation5 + $0x1] ss:$0 sm:$0xff] }
0x103e   : > { %v2536_v25 = vsel %vm942_vm5, %v2535_v22, -1e+09 }
0x103f   : > { %v2537_v26 = vsel %vm866_vm4, %v2536_v25, -inf }
0x1040   : > { %2538 = vmax.xlane.f32.xlu1 %v2537_v26 }
0x1051   : > { %2214 = vrot.lane.b32.xlu1 %v4756_v59, %s5045_s27 }
0x10c1   : > { %v2038_v23 = vpop.xlane.xlu1 %2037 }
0x10c2   : > { %v2039_v28 = vsub.f32 %v2035_v11, %v2038_v23  ;;  %v2205_v29 = vpop.xlane.xlu0 %2204 }
0x10c3   : > { %v2206_v30 = vsub.f32 %v2202_v13, %v2205_v29 }
0x10c4   : > { %v2040_v31 = vmul.f32 1.442695, %v2039_v28 }
0x10c5   : > { %v2207_v32 = vmul.f32 1.442695, %v2206_v30 }
0x10c6   : > { %3774 = vpow2.f32 %v2040_v31 }
0x10c7   : > { %3776 = vpow2.f32 %v2207_v32 }
0x10c9   : > { %v2372_v41 = vpop.xlane.xlu0 %2371 }
0x10ca   : > { %v2373_v42 = vsub.f32 %v2369_v18, %v2372_v41 }
0x10cc   : > { %v2374_v43 = vmul.f32 1.442695, %v2373_v42  ;;  %v3261_v42 = vld [vmem:[%s5042_s1 + $0x60] sm:$0xff] }
0x10cd   : > { %v2539_v33 = vpop.xlane.xlu1 %2538 }
0x10ce   : > { %v2540_v34 = vsub.f32 %v2536_v25, %v2539_v33  ;;  %v3252_v33 = vld [vmem:[%s5041_s19 + $0x28] sm:$0xff] }
0x10d0   : > { %v3775_v35 = vpop.eup %3774  ;;  %v2541_v36 = vmul.f32 1.442695, %v2540_v34 }
0x10d1   : > { %v3777_v27 = vpop.eup %3776  ;;  %v2042_v37 = vsel %vm866_vm4, %v3775_v35, 0.0  ;;  %v2215_v46 = vpop.permute.xlu1 %2214 }
0x10d2   : > { %3778 = vpow2.f32 %v2541_v36  ;;  %2043 = vadd.xlane.f32.xlu0 %v2042_v37  ;;  %v2209_v38 = vsel %vm866_vm4, %v3777_v27, 0.0  ;;  %v3258_v37 = vld [vmem:[%s5042_s1 + $0x48] sm:$0xff] }
0x10d3   : > { %2210 = vadd.xlane.f32.xlu1 %v2209_v38  ;;  %3780 = vpow2.f32 %v2374_v43  ;;  %v3259_v38 = vld [vmem:[%s5042_s1 + $0x50] sm:$0xff]  ;;  %v3262_v43 = vld [vmem:[%s5042_s1 + $0x68] sm:$0xff] }
0x10dc   : > { %v3779_v39 = vpop.eup %3778 }
0x10dd   : > { %v2543_v40 = vsel %vm866_vm4, %v3779_v39, 0.0  ;;  %v3781_v44 = vpop.eup %3780 }
0x10de   : > { %2544 = vadd.xlane.f32.xlu1 %v2543_v40  ;;  %v2376_v45 = vsel %vm866_vm4, %v3781_v44, 0.0  ;;  %v3260_v40 = vld [vmem:[%s5042_s1 + $0x58] sm:$0xff] }
0x10df   : > { %v3603_v41 = vpack.c.bf16 %v3260_v40, %v3259_v38 }
0x10e8   : > { %2047 = vrot.lane.b32.xlu0 %v4756_v59, %s5046_s24 }
0x10ef   : > { %2381 = vrot.lane.b32.xlu1 %v4756_v59, %s5047_s23 }
0x1107   : > { %2377 = vadd.xlane.f32.xlu0 %v2376_v45 }
0x111d   : > { %2548 = vrot.lane.b32.xlu0 %v4756_v59, %s5048_s21  ;;  %s5054_s21 = sld [smem:[#allocation36_spill]] }
0x115f   : > { %v2044_v48 = vpop.xlane.xlu0 %2043 }
0x1160   : > { %3782 = vrcp.f32 %v2044_v48  ;;  %v2211_v49 = vpop.xlane.xlu1 %2210 }
0x1161   : > { %3784 = vrcp.f32 %v2211_v49 }
0x1163   : > { %v2048_v50 = vpop.permute.xlu0 %2047 }
0x1164   : > { %3473 = vmatpush3.msra.mxu0 %v2048_v50  ;;  %v3249_v50 = vld [vmem:[#allocation7 + $0x1] ss:$0 sm:$0xff] }
0x1165   : > { %3482 = vmatprep.subr.mxu0 %v4116_v2 }
0x116a   : > { %v3783_v51 = vpop.eup %3782 }
0x116b   : > { %v3785_v52 = vpop.eup %3784  ;;  %v2046_v53 = vmul.f32 %v3783_v51, %v3775_v35  ;;  %v2545_v54 = vpop.xlane.xlu1 %2544  ;;  %v3254_v35 = vld [vmem:[%s5041_s19 + $0x38] sm:$0xff] }
0x116c   : > { %v2213_v55 = vmul.f32 %v3785_v52, %v3777_v27  ;;  %3786 = vrcp.f32 %v2545_v54  ;;  %v3257_v27 = vld [vmem:[%s5042_s1 + $0x40] sm:$0xff]  ;;  %v3250_v52 = vld [vmem:[#allocation8 + $0x1] ss:$0 sm:$0xff] }
0x116d   : > { %3239 = vst.msk [vmem:[%s4596_s12 + $0x20] sm:$0xff] %vm866_vm4, %v2046_v53  ;;  %3475 = vmatmul.mubr.msk.f32.vlgmr.msra.gmra.mrb[18].mxu0 %vm866_vm4, %v2046_v53 }
0x116e   : > { %3240 = vst.msk [vmem:[%s4596_s12 + $0x28] sm:$0xff] %vm866_vm4, %v2213_v55  ;;  %3483 = vmatpush3.msra.mxu0 %v2215_v46  ;;  %3484 = vmatprep.mubr.msk.f32.mxu0 %vm4117_vm0, %v4116_v2 }
0x116f   : > { %v2382_v47 = vpop.permute.xlu1 %2381  ;;  %3492 = vmatprep.subr.mxu0 %v4116_v2 }
0x1171   : > { %3485 = vmatmul.mubr.msk.f32.vlgmr.msra.gmra.mrb[20].mxu0 %vm866_vm4, %v2213_v55  ;;  %v3263_v55 = vld [vmem:[%s5042_s1 + $0x70] sm:$0xff] }
0x1172   : > { %3493 = vmatpush3.msra.mxu0 %v2382_v47  ;;  %3494 = vmatprep.mubr.msk.f32.mxu0 %vm4117_vm0, %v4116_v2 }
0x1173   : > { %3502 = vmatprep.subr.mxu0 %v4116_v2 }
0x1176   : > { %v3787_v57 = vpop.eup %3786 }
0x1177   : > { %v2547_v58 = vmul.f32 %v3787_v57, %v3779_v39  ;;  %v3600_v39 = vpack.c.bf16 %v3258_v37, %v3257_v27  ;;  %v3255_v57 = vld [vmem:[#allocation10 + $0x1] ss:$0 sm:$0xff] }
0x1179   : > { %3242 = vst.msk [vmem:[%s4596_s12 + $0x38] sm:$0xff] %vm866_vm4, %v2547_v58 }
0x1194   : > { %v2378_v59 = vpop.xlane.xlu0 %2377 }
0x1195   : > { %3788 = vrcp.f32 %v2378_v59 }
0x1198   : > { %v2549_v62 = vpop.permute.xlu0 %2548 }
0x119f   : > { %v3789_v60 = vpop.eup %3788 }
0x11a0   : > { %v2380_v61 = vmul.f32 %v3789_v60, %v3781_v44  ;;  %v3606_v44 = vpack.c.bf16 %v3262_v43, %v3261_v42 }
0x11a2   : > { %3241 = vst.msk [vmem:[%s4596_s12 + $0x30] sm:$0xff] %vm866_vm4, %v2380_v61  ;;  %3495 = vmatmul.mubr.msk.f32.vlgmr.msra.gmra.mrb[22].mxu0 %vm866_vm4, %v2380_v61 }
0x11a3   : > { %3503 = vmatpush3.msra.mxu0 %v2549_v62  ;;  %3504 = vmatprep.mubr.msk.f32.mxu0 %vm4117_vm0, %v4116_v2  ;;  %v3265_v62 = vld [vmem:[#allocation11 + $0x1] ss:$0 sm:$0xff] }
0x11a4   : > { %3593 = vmatprep.subr.bf16.mxu0 %v4115_v1 }
0x11a6   : > { %3505 = vmatmul.mubr.msk.f32.vlgmr.msra.gmra.mrb[24].mxu0 %vm866_vm4, %v2547_v58 }
0x11a7   : > { %3526 = vmatprep.mubr.msk.f32.mxu0 %vm4117_vm0, %v4116_v2 }
0x1240   : > { %v2119_v3 = vpop.f32.mrb[18].mxu0 }
0x1241   : > { %v3476_v4 = vpop.f32.mrb[19].mxu0 }
0x1244   : > { %v2286_v5 = vpop.f32.mrb[20].mxu0 }
0x1245   : > { %2630 = vrot.lane.b32.xlu1 %v2286_v5, %s5049_s30  ;;  %v3486_v6 = vpop.f32.mrb[21].mxu0 }
0x1275   : > { %v2453_v10 = vpop.f32.mrb[22].mxu0 }
0x1276   : > { %2634 = vrot.lane.b32.xlu0 %v2453_v10, %s5050_s25  ;;  %v3496_v11 = vpop.f32.mrb[23].mxu0  ;;  %s3270_s25 = sshll.u32 %s4244_s28, 7  ;;  %s4132_s28 = smov [#allocation16]  }
0x1277   : > { %s4916_s18 = scalar_lea.hbm %s5054_s21, %s3270_s25  ;;  %s4022_s12 = sshll.u32 %s4132_s28, 4  ;;  %s4023_s12 = int_to_ptr.vmem [resolvable:$false] %s4022_s12 }
0x1278   : > { %s4024_s30 = scalar_lea.vmem %s4023_s12, 256 }
0x1279   : > { %v2620_v12 = vpop.f32.mrb[24].mxu0 }
0x127a   : > { %2638 = vrot.lane.b32.xlu1 %v2620_v12, %s5051_s0  ;;  %v3506_v13 = vpop.f32.mrb[25].mxu0  ;;  %s670_s0 = scalar_lea.vmem [#allocation16], %s3189_s29 }
0x127b   : > { %s2991_s27 = sshll.u32 %s670_s0, 4  ;;  %s4918_s27 = int_to_ptr.vmem [resolvable:$true] %s2991_s27 }
0x127c   : > { %s4018_s26 = scalar_lea.vmem %s4918_s27, 128  ;;  %p4025_p10 = scmp.lt.s32.totalorder %s4918_s27, %s4023_s12 }
0x127d   : > { %p4019_p6 = scmp.ne.s32.totalorder %s4918_s27, %s4018_s26  ;;  %p4026_p2 = scmp.lt.s32.totalorder %s4024_s30, %s4018_s26 }
0x127f   : > { %p4020_p5 = pnand %p4019_p6, %p5055_p9  ;;  %p4027_p3 = por %p4026_p2, %p4025_p10 }
0x1281   : > { %p4021_p0 = pneg %p4020_p5 }
0x1283   : > { %p4028_p4 = pnand %p4027_p3, %p4021_p0 }
0x12b7   : > { %v2631_v14 = vpop.permute.xlu1 %2630 }
0x12b8   : > { %v2641_v16 = vsel %vm866_vm4, %v2119_v3, %v2631_v14  ;;  %v3267_v14 = vld [vmem:[#allocation13 + $0x1] ss:$0 sm:$0xff] }
0x12e8   : > { %v2635_v15 = vpop.permute.xlu0 %2634 }
0x12e9   : > { %v2642_v17 = vsel %vm703_vm1, %v2641_v16, %v2635_v15  ;;  %v3268_v16 = vld [vmem:[#allocation14 + $0x1] ss:$0 sm:$0xff] }
0x12ec   : > { %v2639_v18 = vpop.permute.xlu1 %2638 }
0x12ed   : > { %v2643_v20 = vsel %vm1550_vm6, %v2642_v17, %v2639_v18 }
0x12ee   : > { %3516 = vmatmul.mubr.msk.f32.vlgmr.msra.gmra.mrb[18].mxu1 %vm789_vm3, %v2643_v20 }
0x12ef   : > { %3545 = vmatprep.mubr.msk.f32.mxu1 %vm4117_vm0, %v4116_v2  ;;  %v3251_v2 = vld [vmem:[%s5041_s19 + $0x20] sm:$0xff]  ;;  %3601 = vmatpush3.bf16.msra.mxu1 %v3600_v39 }
0x12f0   : > { %v3594_v34 = vpack.c.bf16 %v3252_v33, %v3251_v2  ;;  %3602 = vmatprep.subr.bf16.mxu1 %v4115_v1 }
0x12f2   : > { %3595 = vmatpush3.bf16.msra.mxu0 %v3594_v34 }
0x12f3   : > { %3596 = vmatprep.subr.bf16.mxu0 %v4115_v1  ;;  %3604 = vmatpush3.bf16.msra.mxu1 %v3603_v41 }
0x12f4   : > { %3605 = vmatprep.subr.bf16.mxu1 %v4115_v1 }
0x12f7   : > { %3607 = vmatpush3.bf16.msra.mxu1 %v3606_v44 }
0x12f8   : > { %3608 = vmatprep.subr.bf16.mxu1 %v4115_v1  ;;  %v3264_v1 = vld [vmem:[%s5042_s1 + $0x78] sm:$0xff] }
0x12f9   : > { %v3609_v47 = vpack.c.bf16 %v3264_v1, %v3263_v55 }
0x12fb   : > { %3610 = vmatpush3.bf16.msra.mxu1 %v3609_v47 }
0x13c1   : > { %v2726_v22 = vpop.f32.mrb[18].mxu1 }
0x13c2   : > { %v2727_v24 = vadd.f32 %v3247_v21, %v2726_v22  ;;  %v3517_v25 = vpop.f32.mrb[19].mxu1 }
0x13c4   : > { %v2730_v26 = vadd.f32 %v2727_v24, %v4747_v56  ;;  %v3253_v56 = vld [vmem:[%s5041_s19 + $0x30] sm:$0xff] }
0x13c5   : > { %v3597_v36 = vpack.c.bf16 %v3254_v35, %v3253_v56 }
0x13c6   : > { %v2735_v23 = vsel %vm789_vm3, %v2730_v26, 0.0 }
0x13c7   : > { %2736 = vadd.xlane.f32.xlu0 %v2735_v23  ;;  %3598 = vmatpush3.bf16.msra.mxu0 %v3597_v36 }
0x1454   : > { %v2737_v28 = vpop.xlane.xlu0 %2736 }
0x1455   : > { %v2738_v29 = vmul.f32 0.03125, %v2737_v28 }
0x1457   : > { %v2739_v30 = vsub.f32 %v2730_v26, %v2738_v29 }
0x1459   : > { %v2740_v31 = vmul.f32 %v2739_v30, %v2739_v30 }
0x145b   : > { %v2741_v32 = vsel %vm789_vm3, %v2740_v31, 0.0 }
0x145c   : > { %2742 = vadd.xlane.f32.xlu1 %v2741_v32 }
0x14e9   : > { %v2743_v45 = vpop.xlane.xlu1 %2742 }
0x14ea   : > { %v2744_v46 = vmul.f32 0.03125, %v2743_v45 }
0x14ec   : > { %v2745_v48 = vadd.f32 1e-06, %v2744_v46 }
0x14ee   : > { %3790 = vrsqrt.f32 %v2745_v48 }
0x14f8   : > { %v3791_v49 = vpop.eup %3790 }
0x14f9   : > { %v2747_v51 = vmul.f32 %v3791_v49, %v2739_v30 }
0x14fb   : > { %v2754_v53 = vmul.f32 %v3249_v50, %v2747_v51 }
0x14fd   : > { %v2761_v54 = vadd.f32 %v3250_v52, %v2754_v53 }
0x14ff   : > { %3527 = vmatmul.mubr.msk.f32.vlgmr.msra.gmra.mrb[26].mxu0 %vm789_vm3, %v2761_v54 }
0x15d2   : > { %v2844_v58 = vpop.f32.mrb[26].mxu0 }
0x15d3   : > { %v2845_v59 = vadd.f32 %v3255_v57, %v2844_v58  ;;  %v3528_v60 = vpop.f32.mrb[27].mxu0 }
0x15d5   : > { %v2848_v61 = vmax.f32 %v2845_v59, 0.0 }
0x15d7   : > { %3546 = vmatmul.mubr.msk.f32.vlgmr.msra.gmra.mrb[20].mxu1 %vm1767_vm7, %v2848_v61 }
0x16aa   : > { %v2935_v19 = vpop.f32.mrb[20].mxu1 }
0x16ab   : > { %v2936_v63 = vadd.f32 %v3265_v62, %v2935_v19  ;;  %v3547_v0 = vpop.f32.mrb[21].mxu1 }
0x16ad   : > { %v2939_v3 = vadd.f32 %v2936_v63, %v2761_v54 }
0x16af   : > { %v2944_v4 = vsel %vm789_vm3, %v2939_v3, 0.0 }
0x16b0   : > { %2945 = vadd.xlane.f32.xlu0 %v2944_v4 }
0x173d   : > { %v2946_v5 = vpop.xlane.xlu0 %2945 }
0x173e   : > { %v2947_v6 = vmul.f32 0.03125, %v2946_v5 }
0x1740   : > { %v2948_v7 = vsub.f32 %v2939_v3, %v2947_v6 }
0x1742   : > { %v2949_v8 = vmul.f32 %v2948_v7, %v2948_v7 }
0x1744   : > { %v2950_v9 = vsel %vm789_vm3, %v2949_v8, 0.0 }
0x1745   : > { %2951 = vadd.xlane.f32.xlu0 %v2950_v9 }
0x17d2   : > { %v2952_v10 = vpop.xlane.xlu0 %2951 }
0x17d3   : > { %v2953_v11 = vmul.f32 0.03125, %v2952_v10 }
0x17d5   : > { %v2954_v12 = vadd.f32 1e-06, %v2953_v11 }
0x17d7   : > { %3792 = vrsqrt.f32 %v2954_v12 }
0x17e1   : > { %v3793_v13 = vpop.eup %3792 }
0x17e2   : > { %v2956_v15 = vmul.f32 %v3793_v13, %v2948_v7 }
0x17e4   : > { %v2963_v17 = vmul.f32 %v3267_v14, %v2956_v15 }
0x17e6   : > { %v2970_v18 = vadd.f32 %v3268_v16, %v2963_v17 }
0x17e8   : > { %2971 = vst.msk [vmem:[%s670_s0] sm:$0xff] %vm789_vm3, %v2970_v18 }
0x17e9   : > { %4031 = shalt.err (!%p4028_p4)
}
0x17ea   : > { %s4032_s10 = scalar_lea.hbm %s4916_s18, 128  ;;  %s4036_s25 = scalar_lea.hbm %s5054_s21, 256 }
0x17eb   : > { %p4033_p12 = scmp.ne.s32.totalorder %s4916_s18, %s4032_s10  ;;  %p4037_p11 = scmp.lt.u32.totalorder %s4916_s18, %s5054_s21 }
0x17ec   : > { %p4038_p13 = scmp.lt.u32.totalorder %s4036_s25, %s4032_s10  ;;  %p4040_p6 = scmp.lt.u32.totalorder %s4032_s10, %s4916_s18 }
0x17ed   : > { %p4034_p7 = pnand %p4033_p12, %p5055_p9 }
0x17ee   : > { %p4039_p1 = por %p4038_p13, %p4037_p11 }
0x17ef   : > { %p4035_p8 = pneg %p4034_p7 }
0x17f0   : > { %p4041_p5 = por %p4040_p6, %p4039_p1 }
0x17f2   : > { %p4042_p0 = pnand %p4041_p5, %p4035_p8 }
0x17f4   : > { %4045 = shalt.err (!%p4042_p0)
}
0x17f5   : > { %3643 = dma.vmem_to_hbm [thread:$0]  (%p5055_p9), %s4918_s27, 128, %s4916_s18, %s2973_s7  }
0x17f6 PF: > { %s5056_s23 = sld [smem:[#allocation26_spill]]  ;;  %s5057_s26 = sld [smem:[#allocation23_spill]] }
0x17f7   : > { %s5058_s28 = sld [smem:[#allocation30_spill]] }
0x17fc   : > { %p3690_p10 = scmp.ge.s32.totalorder %s5056_s23, 2  ;;  %s3006_s12 = sand.u32 1, %s5057_s26  }
0x17fd   : > { %p5059_p2 = scmp.ne.s32.totalorder %s5058_s28, 0  ;;  %s3007_s30 = scalar_lea.sflag [#allocation4], %s3006_s12 }
0x17ff   : > { %p3671_p3 = pnand %p3690_p10, %p5059_p2 }
0x1801   : > { %4083 = dma.done.wait (!%p3671_p3), %s3007_s30, 128  }
0x1802   : > { %4085 = vsyncadd (!%p3671_p3), %s3007_s30, 4294967168  ;;  %s5060_s27 = sld [smem:[#allocation27_spill]]  ;;  %s5061_s24 = sld [smem:[#allocation24_spill]] }
0x1803   : > { %s5062_s25 = sld [smem:[#allocation25_spill]]  ;;  %s5063_s26 = sld [smem:[#allocation28_spill]] }
0x1808   : > { %p33_p4 = scmp.ge.s32.totalorder %s5060_s27, 4  }
0x180a   :  { %35 = sbr.rel (!%p33_p4) target bundleno = 15 (0xf), region = 180 }
0x1811   :  { %3020 = vsyncpa [#allocation3], 1 }
0x1812   :  { %3022 = vsyncpa [#allocation3 + $0x1], 1 }
0x1813   :  { %3023 = vsyncpa [#allocation6], 1 }
0x1814   :  { %3024 = vsyncpa [#allocation9], 1 }
0x1815   :  { %3025 = vsyncpa [#allocation12], 1 }
0x1816   :  { %3026 = vsyncpa [#allocation15], 1 }
0x1817   :  { %3027 = vsyncpa [#allocation4], 1 }
0x1818   :  { %3029 = vsyncpa [#allocation4 + $0x1], 1 }

</bundles_post_ra>
